<compile_context>
chip_gen: v6e
topology: v6e:2x2x1
jax: 0.10.0
libtpu: 0.0.40
codegen_flags: <defaults>
</compile_context>

<pallas_src>
import jax
import jax.numpy as jnp
from jax.experimental import pallas as pl
from jax.experimental.pallas import tpu as pltpu

# ----- small synthetic CLIP-text config -----
VOCAB    = 64          # vocab size (EOS = VOCAB - 1, PAD = 0)
SEQ      = 8           # text_max_length
HIDDEN   = 32          # hidden_size (output_dim of the encoder)
HEADS    = 2
HEAD_DIM = HIDDEN // HEADS
INTER    = 4 * HIDDEN  # CLIP MLP intermediate = 4 * hidden
LAYERS   = 2
LN_EPS   = 1e-5
BATCH    = 2

assert HEADS * HEAD_DIM == HIDDEN


# ---------------------------------------------------------------------------
# In-kernel helpers
# ---------------------------------------------------------------------------
def _ln(x, g, b):
    """Single-pass LayerNorm over the last (lane) dim: one cross-lane reduce."""
    mu = jnp.mean(x, axis=-1, keepdims=True)
    var = jnp.mean(x * x, axis=-1, keepdims=True) - mu * mu
    return (x - mu) * jax.lax.rsqrt(var + LN_EPS) * g + b


# ---------------------------------------------------------------------------
# Fused Pallas kernel: whole batch, all encoder layers + final LayerNorm,
# in a single grid step.
# ---------------------------------------------------------------------------
def clip_text_kernel(lens_ref,                 # scalar prefetch (SMEM): (B,) int32
                     x_ref,                    # (B*S, D) f32
                     wqkv_ref, bqkv_ref, wo_ref,
                     w1_ref, b1_ref, w2_ref, vec_ref, fln_ref,
                     out_ref,                  # (B*S, D) f32
                     ctx_ref):                 # VMEM scratch (B*S, D) f32
    D = HIDDEN
    x = x_ref[...]                                             # (B*S, D) f32

    # --- additive attention bias (causal + key padding), built in-kernel
    #     from SMEM lengths; matches reference's additive -1e9 combination ---
    neg = jnp.float32(-1e9)
    qpos = jax.lax.broadcasted_iota(jnp.int32, (SEQ, SEQ), 0)
    kpos = jax.lax.broadcasted_iota(jnp.int32, (SEQ, SEQ), 1)
    causal = jnp.where(kpos <= qpos, jnp.float32(0.0), neg)   # (S, S)
    biases = []
    for b in range(BATCH):
        ln_b = lens_ref[b]                                    # scalar int32 from SMEM
        pad = jnp.where(kpos < ln_b, jnp.float32(0.0), neg)   # (S, S)
        biases.append(causal + pad)

    for l in range(LAYERS):            # static unroll: all layers fused in VMEM
        vec = vec_ref[l]               # (6, D): ln1_g, ln1_b, ln2_g, ln2_b, bo, b2
        ln1_g, ln1_b = vec[0], vec[1]
        ln2_g, ln2_b = vec[2], vec[3]
        bo, b2 = vec[4], vec[5]
        wqkv = wqkv_ref[l]             # (D, 3D) bf16 (Q columns pre-scaled)
        bqkv = bqkv_ref[l]             # (3D,)  f32
        wo = wo_ref[l]                 # (D, D)  bf16
        w1 = w1_ref[l]                 # (D, INTER) bf16
        b1 = b1_ref[l]                 # (INTER,) f32
        w2 = w2_ref[l]                 # (INTER, D) bf16

        # ---- self-attention block (pre-LayerNorm) ----
        h = _ln(x, ln1_g, ln1_b)                               # f32 (B*S, D)
        qkv = jnp.dot(h.astype(jnp.bfloat16), wqkv,
                      preferred_element_type=jnp.float32) + bqkv   # (B*S, 3D) f32

        # per-(batch, head) attention with static slices; ctx goes into the
        # VMEM scratch buffer (no stack / concat lane relayouts).
        for b in range(BATCH):
            r0 = b * SEQ
            for hh in range(HEADS):
                c = hh * HEAD_DIM
                qs = qkv[r0:r0 + SEQ, c:c + HEAD_DIM].astype(jnp.bfloat16)
                ks = qkv[r0:r0 + SEQ, D + c:D + c + HEAD_DIM].astype(jnp.bfloat16)
                vs = qkv[r0:r0 + SEQ, 2 * D + c:2 * D + c + HEAD_DIM].astype(jnp.bfloat16)
                s = jnp.einsum('qd,kd->qk', qs, ks,
                               preferred_element_type=jnp.float32) + biases[b]
                s = s - jnp.max(s, axis=-1, keepdims=True)
                p = jnp.exp(s)
                p = p / jnp.sum(p, axis=-1, keepdims=True)     # exact divide (f32)
                ctx = jnp.dot(p.astype(jnp.bfloat16), vs,
                              preferred_element_type=jnp.float32)  # (S, Dh) f32
                ctx_ref[r0:r0 + SEQ, c:c + HEAD_DIM] = ctx

        attn = ctx_ref[...].astype(jnp.bfloat16)               # (B*S, D)
        x = x + jnp.dot(attn, wo, preferred_element_type=jnp.float32) + bo

        # ---- MLP block (pre-LayerNorm, quick_gelu) ----
        h2 = _ln(x, ln2_g, ln2_b)
        f = jnp.dot(h2.astype(jnp.bfloat16), w1,
                    preferred_element_type=jnp.float32) + b1
        f = f * jax.nn.sigmoid(jnp.float32(1.702) * f)         # quick_gelu (f32 VPU/EUP)
        x = x + jnp.dot(f.astype(jnp.bfloat16), w2,
                        preferred_element_type=jnp.float32) + b2

    # ---- final LayerNorm; single writeback for the whole stack ----
    out_ref[...] = _ln(x, fln_ref[0], fln_ref[1]).astype(out_ref.dtype)


# ---------------------------------------------------------------------------
# Wrapper: single pallas_call, single grid step, for the whole transformer
# ---------------------------------------------------------------------------
def clip_encoder_pallas(x_emb, attention_mask, stacked, fln):
    B, S, D = x_emb.shape
    x2d = x_emb.reshape(B * S, D).astype(jnp.float32)
    lengths = jnp.sum(attention_mask.astype(jnp.int32), axis=-1)   # (B,) int32 -> SMEM
    wqkv, bqkv, wo, w1, b1, w2, vec = stacked
    args = (x2d, wqkv, bqkv, wo, w1, b1, w2, vec, fln)

    def full(shape):
        nd = len(shape)
        # index_map receives (grid idx, scalar-prefetch ref); full-array block.
        return pl.BlockSpec(tuple(shape), lambda i, lens, _n=nd: (0,) * _n)

    out = pl.pallas_call(
        clip_text_kernel,
        out_shape=jax.ShapeDtypeStruct((B * S, D), jnp.float32),
        grid_spec=pltpu.PrefetchScalarGridSpec(
            num_scalar_prefetch=1,
            grid=(1,),                                  # single step: no per-batch launches
            in_specs=[full(a.shape) for a in args],
            out_specs=full((B * S, D)),
            scratch_shapes=[pltpu.VMEM((B * S, D), jnp.float32)]),  # ctx buffer
        compiler_params=pltpu.CompilerParams(
            dimension_semantics=("arbitrary",)),        # no megacore split at B=2
    )(lengths, *args)
    return out.reshape(B, S, D)


# ---------------------------------------------------------------------------
# Parameter init (deterministic, synthetic) + packed layouts for the kernel
# ---------------------------------------------------------------------------
def init_params(key):
    ks = iter(jax.random.split(key, 8 + LAYERS * 6))
    p = {}
    p['tok_emb'] = jax.random.normal(next(ks), (VOCAB, HIDDEN), jnp.float32) * 0.02
    p['pos_emb'] = jax.random.normal(next(ks), (SEQ, HIDDEN), jnp.float32) * 0.02
    p['final_ln_g'] = jnp.ones((HIDDEN,), jnp.float32)
    p['final_ln_b'] = jnp.zeros((HIDDEN,), jnp.float32)

    layers = []
    for _ in range(LAYERS):
        ln1_g = jnp.ones((HIDDEN,), jnp.float32)
        ln1_b = jnp.zeros((HIDDEN,), jnp.float32)
        wq = jax.random.normal(next(ks), (HIDDEN, HIDDEN), jnp.float32) * 0.02
        wk = jax.random.normal(next(ks), (HIDDEN, HIDDEN), jnp.float32) * 0.02
        wv = jax.random.normal(next(ks), (HIDDEN, HIDDEN), jnp.float32) * 0.02
        wo = jax.random.normal(next(ks), (HIDDEN, HIDDEN), jnp.float32) * 0.02
        bq = jnp.zeros((HIDDEN,), jnp.float32)
        bk = jnp.zeros((HIDDEN,), jnp.float32)
        bv = jnp.zeros((HIDDEN,), jnp.float32)
        bo = jnp.zeros((HIDDEN,), jnp.float32)
        ln2_g = jnp.ones((HIDDEN,), jnp.float32)
        ln2_b = jnp.zeros((HIDDEN,), jnp.float32)
        w1 = jax.random.normal(next(ks), (HIDDEN, INTER), jnp.float32) * 0.02
        b1 = jnp.zeros((INTER,), jnp.float32)
        w2 = jax.random.normal(next(ks), (INTER, HIDDEN), jnp.float32) * 0.02
        b2 = jnp.zeros((HIDDEN,), jnp.float32)
        layers.append((ln1_g, ln1_b, wq, bq, wk, bk, wv, bv, wo, bo,
                       ln2_g, ln2_b, w1, b1, w2, b2))
    p['layers'] = layers

    # --- packed kernel layouts: few large slabs; matmul slabs in bf16; the
    #     1/sqrt(HEAD_DIM) scale is folded into the Q columns / Q bias.      ---
    scale = jnp.float32(HEAD_DIM ** -0.5)

    def gather(fn, dtype=None):
        s = jnp.stack([fn(t) for t in layers], axis=0)
        return s.astype(dtype) if dtype is not None else s

    p['stacked'] = (
        gather(lambda t: jnp.concatenate([t[2] * scale, t[4], t[6]], axis=1),
               jnp.bfloat16),                                             # wqkv (L, D, 3D)
        gather(lambda t: jnp.concatenate([t[3] * scale, t[5], t[7]], axis=0)),  # bqkv (L, 3D) f32
        gather(lambda t: t[8], jnp.bfloat16),                             # wo   (L, D, D)
        gather(lambda t: t[12], jnp.bfloat16),                            # w1   (L, D, INTER)
        gather(lambda t: t[13]),                                          # b1   (L, INTER) f32
        gather(lambda t: t[14], jnp.bfloat16),                            # w2   (L, INTER, D)
        gather(lambda t: jnp.stack(                                       # vec  (L, 6, D) f32
            [t[0], t[1], t[10], t[11], t[9], t[15]], axis=0)),            # ln1_g,ln1_b,ln2_g,ln2_b,bo,b2
    )
    p['fln'] = jnp.stack([p['final_ln_g'], p['final_ln_b']], axis=0)      # (2, D) f32
    return p


# ---------------------------------------------------------------------------
# Full forward: (last_hidden_state, pooler_output)
# ---------------------------------------------------------------------------
def clip_text_encoder_forward(params, input_ids, attention_mask):
    B, S = input_ids.shape
    # embedding gather + learned positional embedding (glue, plain JAX)
    x = jnp.take(params['tok_emb'], input_ids, axis=0) + params['pos_emb'][None, :S, :]
    x = x.astype(jnp.float32)

    last_hidden = clip_encoder_pallas(x, attention_mask, params['stacked'], params['fln'])

    # CLIP pooling: hidden state at the EOS token (argmax of input_ids) — glue
    eos_idx = jnp.argmax(input_ids, axis=-1)
    pooled = last_hidden[jnp.arange(B), eos_idx]
    return last_hidden, pooled


# ---------------------------------------------------------------------------
# Pure-JAX reference (full f32, for a correctness sanity check)
# ---------------------------------------------------------------------------
def _layer_norm_ref(x, g, b):
    mu = jnp.mean(x, axis=-1, keepdims=True)
    var = jnp.mean((x - mu) ** 2, axis=-1, keepdims=True)
    return (x - mu) * jax.lax.rsqrt(var + LN_EPS) * g + b


def _ref_forward(params, input_ids, attention_mask):
    B, S = input_ids.shape
    x = jnp.take(params['tok_emb'], input_ids, axis=0) + params['pos_emb'][None, :S, :]
    neg = jnp.float32(-1e9)
    causal = jnp.where(jnp.tril(jnp.ones((S, S), jnp.bool_)), 0.0, neg)
    pad = (1.0 - attention_mask.astype(jnp.float32))[:, None, :] * neg
    mask = causal[None, :, :] + pad
    for (ln1_g, ln1_b, wq, bq, wk, bk, wv, bv, wo, bo,
         ln2_g, ln2_b, w1, b1, w2, b2) in params['layers']:
        h = _layer_norm_ref(x, ln1_g, ln1_b)
        q = (h @ wq + bq).reshape(B, S, HEADS, HEAD_DIM) * HEAD_DIM ** -0.5
        k = (h @ wk + bk).reshape(B, S, HEADS, HEAD_DIM)
        v = (h @ wv + bv).reshape(B, S, HEADS, HEAD_DIM)
        s = jnp.einsum('bqhd,bkhd->bhqk', q, k) + mask[:, None]
        p = jax.nn.softmax(s, axis=-1)
        ctx = jnp.einsum('bhqk,bkhd->bqhd', p, v).reshape(B, S, HIDDEN)
        x = x + ctx @ wo + bo
        h2 = _layer_norm_ref(x, ln2_g, ln2_b)
        f = h2 @ w1 + b1
        f = f * jax.nn.sigmoid(1.702 * f)
        x = x + f @ w2 + b2
    last = _layer_norm_ref(x, params['final_ln_g'], params['final_ln_b'])
    pooled = last[jnp.arange(B), jnp.argmax(input_ids, axis=-1)]
    return last, pooled


if __name__ == "__main__":
    key = jax.random.PRNGKey(0)
    pkey, tkey = jax.random.split(key)
    params = init_params(pkey)

    # synthetic tokenized batch: tokens in [1, VOCAB-2], EOS(=VOCAB-1) at the end
    # of each sequence, PAD(=0) after; attention_mask marks real tokens (prefix).
    lens = jnp.array([6, SEQ], dtype=jnp.int32)           # per-example lengths
    input_ids = jax.random.randint(tkey, (BATCH, SEQ), 1, VOCAB - 1, dtype=jnp.int32)
    pos = jnp.arange(SEQ)[None, :]
    input_ids = jnp.where(pos == (lens[:, None] - 1), VOCAB - 1, input_ids)  # EOS
    input_ids = jnp.where(pos >= lens[:, None], 0, input_ids)                # PAD
    attention_mask = (pos < lens[:, None]).astype(jnp.int32)

    last_hidden, pooled = clip_text_encoder_forward(params, input_ids, attention_mask)
    last_hidden = jax.block_until_ready(last_hidden)
    pooled = jax.block_until_ready(pooled)

    # sanity check vs. pure-f32 JAX reference.  Tolerance covers the bf16 MXU
    # operand rounding (accumulation stays f32); softmax uses exact divide.
    ref_last, ref_pooled = _ref_forward(params, input_ids, attention_mask)
    assert last_hidden.shape == (BATCH, SEQ, HIDDEN)
    assert pooled.shape == (BATCH, HIDDEN)
    assert jnp.allclose(last_hidden, ref_last, atol=3e-2, rtol=3e-2)
    assert jnp.allclose(pooled, ref_pooled, atol=3e-2, rtol=3e-2)

    print("KERNEL_OK")
</pallas_src>

<mosaic_0001>
module attributes {stable_mosaic.version = 11 : i64} {
  func.func @clip_text_kernel(%arg0: i32, %arg1: memref<2xi32, #tpu.memory_space<smem>>, %arg2: memref<16x32xf32, #tpu.memory_space<vmem>>, %arg3: memref<2x32x96xbf16, #tpu.memory_space<vmem>>, %arg4: memref<2x96xf32, #tpu.memory_space<vmem>>, %arg5: memref<2x32x32xbf16, #tpu.memory_space<vmem>>, %arg6: memref<2x32x128xbf16, #tpu.memory_space<vmem>>, %arg7: memref<2x128xf32, #tpu.memory_space<vmem>>, %arg8: memref<2x128x32xbf16, #tpu.memory_space<vmem>>, %arg9: memref<2x6x32xf32, #tpu.memory_space<vmem>>, %arg10: memref<2x32xf32, #tpu.memory_space<vmem>>, %arg11: memref<16x32xf32, #tpu.memory_space<vmem>>, %arg12: memref<16x32xf32, #tpu.memory_space<vmem>>) attributes {dimension_semantics = [#tpu.dimension_semantics<arbitrary>], iteration_bounds = array<i64: 1>, scalar_prefetch = 1 : i64, scratch_operands = 1 : i64, tpu.core_type = #tpu.core_type<tc>, window_params = [{pipeline_mode = #tpu.pipeline_mode<synchronous>, transform_indices = @transform_0, window_bounds = array<i64: 16, 32>}, {pipeline_mode = #tpu.pipeline_mode<synchronous>, transform_indices = @transform_1, window_bounds = array<i64: 2, 32, 96>}, {pipeline_mode = #tpu.pipeline_mode<synchronous>, transform_indices = @transform_2, window_bounds = array<i64: 2, 96>}, {pipeline_mode = #tpu.pipeline_mode<synchronous>, transform_indices = @transform_3, window_bounds = array<i64: 2, 32, 32>}, {pipeline_mode = #tpu.pipeline_mode<synchronous>, transform_indices = @transform_4, window_bounds = array<i64: 2, 32, 128>}, {pipeline_mode = #tpu.pipeline_mode<synchronous>, transform_indices = @transform_5, window_bounds = array<i64: 2, 128>}, {pipeline_mode = #tpu.pipeline_mode<synchronous>, transform_indices = @transform_6, window_bounds = array<i64: 2, 128, 32>}, {pipeline_mode = #tpu.pipeline_mode<synchronous>, transform_indices = @transform_7, window_bounds = array<i64: 2, 6, 32>}, {pipeline_mode = #tpu.pipeline_mode<synchronous>, transform_indices = @transform_8, window_bounds = array<i64: 2, 32>}, {pipeline_mode = #tpu.pipeline_mode<synchronous>, transform_indices = @transform_9, window_bounds = array<i64: 16, 32>}]} {
    %c0 = arith.constant 0 : index
    %c0_0 = arith.constant 0 : index
    %0 = vector.load %arg2[%c0, %c0_0] : memref<16x32xf32, #tpu.memory_space<vmem>>, vector<16x32xf32>
    %1 = tpu.iota {dimensions = array<i32: 0>} : vector<8x8xi32>
    %2 = tpu.iota {dimensions = array<i32: 1>} : vector<8x8xi32>
    %3 = arith.cmpi sle, %2, %1 : vector<8x8xi32>
    %cst = arith.constant 0.000000e+00 : f32
    %cst_1 = arith.constant -1.000000e+09 : f32
    %4 = vector.broadcast %cst : f32 to vector<8x8xf32>
    %5 = vector.broadcast %cst_1 : f32 to vector<8x8xf32>
    %6 = arith.select %3, %4, %5 : vector<8x8xi1>, vector<8x8xf32>
    %c0_2 = arith.constant 0 : index
    %7 = memref.load %arg1[%c0_2] : memref<2xi32, #tpu.memory_space<smem>>
    %8 = vector.broadcast %7 : i32 to vector<8x8xi32>
    %9 = arith.cmpi slt, %2, %8 : vector<8x8xi32>
    %cst_3 = arith.constant 0.000000e+00 : f32
    %cst_4 = arith.constant -1.000000e+09 : f32
    %10 = vector.broadcast %cst_3 : f32 to vector<8x8xf32>
    %11 = vector.broadcast %cst_4 : f32 to vector<8x8xf32>
    %12 = arith.select %9, %10, %11 : vector<8x8xi1>, vector<8x8xf32>
    %13 = arith.addf %6, %12 : vector<8x8xf32>
    %c1 = arith.constant 1 : index
    %14 = memref.load %arg1[%c1] : memref<2xi32, #tpu.memory_space<smem>>
    %15 = vector.broadcast %14 : i32 to vector<8x8xi32>
    %16 = arith.cmpi slt, %2, %15 : vector<8x8xi32>
    %cst_5 = arith.constant 0.000000e+00 : f32
    %cst_6 = arith.constant -1.000000e+09 : f32
    %17 = vector.broadcast %cst_5 : f32 to vector<8x8xf32>
    %18 = vector.broadcast %cst_6 : f32 to vector<8x8xf32>
    %19 = arith.select %16, %17, %18 : vector<8x8xi1>, vector<8x8xf32>
    %20 = arith.addf %6, %19 : vector<8x8xf32>
    %c0_7 = arith.constant 0 : index
    %c0_8 = arith.constant 0 : index
    %c0_9 = arith.constant 0 : index
    %21 = vector.load %arg9[%c0_7, %c0_8, %c0_9] : memref<2x6x32xf32, #tpu.memory_space<vmem>>, vector<1x6x32xf32>
    %22 = vector.shape_cast %21 : vector<1x6x32xf32> to vector<6x32xf32>
    %23 = vector.extract_strided_slice %22 {offsets = [0, 0], sizes = [1, 32], strides = [1, 1]} : vector<6x32xf32> to vector<1x32xf32>
    %24 = vector.shape_cast %23 : vector<1x32xf32> to vector<32xf32>
    %25 = vector.extract_strided_slice %22 {offsets = [1, 0], sizes = [1, 32], strides = [1, 1]} : vector<6x32xf32> to vector<1x32xf32>
    %26 = vector.shape_cast %25 : vector<1x32xf32> to vector<32xf32>
    %27 = vector.extract_strided_slice %22 {offsets = [2, 0], sizes = [1, 32], strides = [1, 1]} : vector<6x32xf32> to vector<1x32xf32>
    %28 = vector.shape_cast %27 : vector<1x32xf32> to vector<32xf32>
    %29 = vector.extract_strided_slice %22 {offsets = [3, 0], sizes = [1, 32], strides = [1, 1]} : vector<6x32xf32> to vector<1x32xf32>
    %30 = vector.shape_cast %29 : vector<1x32xf32> to vector<32xf32>
    %31 = vector.extract_strided_slice %22 {offsets = [4, 0], sizes = [1, 32], strides = [1, 1]} : vector<6x32xf32> to vector<1x32xf32>
    %32 = vector.shape_cast %31 : vector<1x32xf32> to vector<32xf32>
    %33 = vector.extract_strided_slice %22 {offsets = [5, 0], sizes = [1, 32], strides = [1, 1]} : vector<6x32xf32> to vector<1x32xf32>
    %34 = vector.shape_cast %33 : vector<1x32xf32> to vector<32xf32>
    %c0_10 = arith.constant 0 : index
    %c0_11 = arith.constant 0 : index
    %c0_12 = arith.constant 0 : index
    %35 = vector.load %arg3[%c0_10, %c0_11, %c0_12] : memref<2x32x96xbf16, #tpu.memory_space<vmem>>, vector<1x32x96xbf16>
    %36 = vector.shape_cast %35 : vector<1x32x96xbf16> to vector<32x96xbf16>
    %c0_13 = arith.constant 0 : index
    %c0_14 = arith.constant 0 : index
    %37 = vector.load %arg4[%c0_13, %c0_14] : memref<2x96xf32, #tpu.memory_space<vmem>>, vector<1x96xf32>
    %38 = vector.shape_cast %37 : vector<1x96xf32> to vector<96xf32>
    %c0_15 = arith.constant 0 : index
    %c0_16 = arith.constant 0 : index
    %c0_17 = arith.constant 0 : index
    %39 = vector.load %arg5[%c0_15, %c0_16, %c0_17] : memref<2x32x32xbf16, #tpu.memory_space<vmem>>, vector<1x32x32xbf16>
    %40 = vector.shape_cast %39 : vector<1x32x32xbf16> to vector<32x32xbf16>
    %c0_18 = arith.constant 0 : index
    %c0_19 = arith.constant 0 : index
    %c0_20 = arith.constant 0 : index
    %41 = vector.load %arg6[%c0_18, %c0_19, %c0_20] : memref<2x32x128xbf16, #tpu.memory_space<vmem>>, vector<1x32x128xbf16>
    %42 = vector.shape_cast %41 : vector<1x32x128xbf16> to vector<32x128xbf16>
    %c0_21 = arith.constant 0 : index
    %c0_22 = arith.constant 0 : index
    %43 = vector.load %arg7[%c0_21, %c0_22] : memref<2x128xf32, #tpu.memory_space<vmem>>, vector<1x128xf32>
    %44 = vector.shape_cast %43 : vector<1x128xf32> to vector<128xf32>
    %c0_23 = arith.constant 0 : index
    %c0_24 = arith.constant 0 : index
    %c0_25 = arith.constant 0 : index
    %45 = vector.load %arg8[%c0_23, %c0_24, %c0_25] : memref<2x128x32xbf16, #tpu.memory_space<vmem>>, vector<1x128x32xbf16>
    %46 = vector.shape_cast %45 : vector<1x128x32xbf16> to vector<128x32xbf16>
    %cst_26 = arith.constant dense<0.000000e+00> : vector<16xf32>
    %47 = vector.multi_reduction <add>, %0, %cst_26 [1] : vector<16x32xf32> to vector<16xf32>
    %48 = vector.shape_cast %47 : vector<16xf32> to vector<16x1xf32>
    %cst_27 = arith.constant 3.200000e+01 : f32
    %49 = vector.broadcast %cst_27 : f32 to vector<16x1xf32>
    %50 = arith.divf %48, %49 : vector<16x1xf32>
    %51 = arith.mulf %0, %0 : vector<16x32xf32>
    %cst_28 = arith.constant dense<0.000000e+00> : vector<16xf32>
    %52 = vector.multi_reduction <add>, %51, %cst_28 [1] : vector<16x32xf32> to vector<16xf32>
    %53 = vector.shape_cast %52 : vector<16xf32> to vector<16x1xf32>
    %cst_29 = arith.constant 3.200000e+01 : f32
    %54 = vector.broadcast %cst_29 : f32 to vector<16x1xf32>
    %55 = arith.divf %53, %54 : vector<16x1xf32>
    %56 = arith.mulf %50, %50 : vector<16x1xf32>
    %57 = arith.subf %55, %56 : vector<16x1xf32>
    %58 = vector.broadcast %50 : vector<16x1xf32> to vector<16x32xf32>
    %59 = arith.subf %0, %58 : vector<16x32xf32>
    %cst_30 = arith.constant 9.99999974E-6 : f32
    %60 = vector.broadcast %cst_30 : f32 to vector<16x1xf32>
    %61 = arith.addf %57, %60 : vector<16x1xf32>
    %62 = math.rsqrt %61 : vector<16x1xf32>
    %63 = vector.broadcast %62 : vector<16x1xf32> to vector<16x32xf32>
    %64 = arith.mulf %59, %63 : vector<16x32xf32>
    %65 = vector.shape_cast %24 : vector<32xf32> to vector<1x32xf32>
    %66 = vector.broadcast %65 : vector<1x32xf32> to vector<16x32xf32>
    %67 = arith.mulf %64, %66 : vector<16x32xf32>
    %68 = vector.shape_cast %26 : vector<32xf32> to vector<1x32xf32>
    %69 = vector.broadcast %68 : vector<1x32xf32> to vector<16x32xf32>
    %70 = arith.addf %67, %69 : vector<16x32xf32>
    %71 = arith.truncf %70 : vector<16x32xf32> to vector<16x32xbf16>
    %cst_31 = arith.constant dense<0.000000e+00> : vector<16x96xf32>
    %72 = tpu.matmul %71, %36, %cst_31 {dimension_numbers = #tpu.dot_dimension_numbers<[1], [0], [0], [1], [0, 0, 1, 1], [], []>} : vector<16x32xbf16>, vector<32x96xbf16>, vector<16x96xf32> -> vector<16x96xf32>
    %73 = vector.shape_cast %38 : vector<96xf32> to vector<1x96xf32>
    %74 = vector.broadcast %73 : vector<1x96xf32> to vector<16x96xf32>
    %75 = arith.addf %72, %74 : vector<16x96xf32>
    %76 = vector.extract_strided_slice %75 {offsets = [0, 0], sizes = [8, 16], strides = [1, 1]} : vector<16x96xf32> to vector<8x16xf32>
    %77 = arith.truncf %76 : vector<8x16xf32> to vector<8x16xbf16>
    %78 = vector.extract_strided_slice %75 {offsets = [0, 32], sizes = [8, 16], strides = [1, 1]} : vector<16x96xf32> to vector<8x16xf32>
    %79 = arith.truncf %78 : vector<8x16xf32> to vector<8x16xbf16>
    %80 = vector.extract_strided_slice %75 {offsets = [0, 64], sizes = [8, 16], strides = [1, 1]} : vector<16x96xf32> to vector<8x16xf32>
    %81 = arith.truncf %80 : vector<8x16xf32> to vector<8x16xbf16>
    "tpu.trace_start"() <{level = 10 : i32, message = "qd,kd->qk"}> : () -> ()
    %cst_32 = arith.constant dense<0.000000e+00> : vector<8x8xf32>
    %82 = tpu.matmul %77, %79, %cst_32 {dimension_numbers = #tpu.dot_dimension_numbers<[1], [1], [0], [0], [0, 0, 1, 0], [], []>} : vector<8x16xbf16>, vector<8x16xbf16>, vector<8x8xf32> -> vector<8x8xf32>
    "tpu.trace_stop"() : () -> ()
    %83 = arith.addf %82, %13 : vector<8x8xf32>
    %cst_33 = arith.constant dense<0xFF800000> : vector<8xf32>
    %84 = vector.multi_reduction <maximumf>, %83, %cst_33 [1] : vector<8x8xf32> to vector<8xf32>
    %85 = vector.shape_cast %84 : vector<8xf32> to vector<8x1xf32>
    %86 = vector.broadcast %85 : vector<8x1xf32> to vector<8x8xf32>
    %87 = arith.subf %83, %86 : vector<8x8xf32>
    %88 = math.exp %87 : vector<8x8xf32>
    %cst_34 = arith.constant dense<0.000000e+00> : vector<8xf32>
    %89 = vector.multi_reduction <add>, %88, %cst_34 [1] : vector<8x8xf32> to vector<8xf32>
    %90 = vector.shape_cast %89 : vector<8xf32> to vector<8x1xf32>
    %91 = vector.broadcast %90 : vector<8x1xf32> to vector<8x8xf32>
    %92 = arith.divf %88, %91 : vector<8x8xf32>
    %93 = arith.truncf %92 : vector<8x8xf32> to vector<8x8xbf16>
    %cst_35 = arith.constant dense<0.000000e+00> : vector<8x16xf32>
    %94 = tpu.matmul %93, %81, %cst_35 {dimension_numbers = #tpu.dot_dimension_numbers<[1], [0], [0], [1], [0, 0, 1, 1], [], []>} : vector<8x8xbf16>, vector<8x16xbf16>, vector<8x16xf32> -> vector<8x16xf32>
    %c0_36 = arith.constant 0 : index
    %c0_37 = arith.constant 0 : index
    %95 = vector.load %arg12[%c0_36, %c0_37] : memref<16x32xf32, #tpu.memory_space<vmem>>, vector<8x16xf32>
    tpu.vector_store %arg12[%c0_36, %c0_37], %94 {strides = array<i32>} : memref<16x32xf32, #tpu.memory_space<vmem>>, vector<8x16xf32>,
    %96 = vector.extract_strided_slice %75 {offsets = [0, 16], sizes = [8, 16], strides = [1, 1]} : vector<16x96xf32> to vector<8x16xf32>
    %97 = arith.truncf %96 : vector<8x16xf32> to vector<8x16xbf16>
    %98 = vector.extract_strided_slice %75 {offsets = [0, 48], sizes = [8, 16], strides = [1, 1]} : vector<16x96xf32> to vector<8x16xf32>
    %99 = arith.truncf %98 : vector<8x16xf32> to vector<8x16xbf16>
    %100 = vector.extract_strided_slice %75 {offsets = [0, 80], sizes = [8, 16], strides = [1, 1]} : vector<16x96xf32> to vector<8x16xf32>
    %101 = arith.truncf %100 : vector<8x16xf32> to vector<8x16xbf16>
    "tpu.trace_start"() <{level = 10 : i32, message = "qd,kd->qk"}> : () -> ()
    %cst_38 = arith.constant dense<0.000000e+00> : vector<8x8xf32>
    %102 = tpu.matmul %97, %99, %cst_38 {dimension_numbers = #tpu.dot_dimension_numbers<[1], [1], [0], [0], [0, 0, 1, 0], [], []>} : vector<8x16xbf16>, vector<8x16xbf16>, vector<8x8xf32> -> vector<8x8xf32>
    "tpu.trace_stop"() : () -> ()
    %103 = arith.addf %102, %13 : vector<8x8xf32>
    %cst_39 = arith.constant dense<0xFF800000> : vector<8xf32>
    %104 = vector.multi_reduction <maximumf>, %103, %cst_39 [1] : vector<8x8xf32> to vector<8xf32>
    %105 = vector.shape_cast %104 : vector<8xf32> to vector<8x1xf32>
    %106 = vector.broadcast %105 : vector<8x1xf32> to vector<8x8xf32>
    %107 = arith.subf %103, %106 : vector<8x8xf32>
    %108 = math.exp %107 : vector<8x8xf32>
    %cst_40 = arith.constant dense<0.000000e+00> : vector<8xf32>
    %109 = vector.multi_reduction <add>, %108, %cst_40 [1] : vector<8x8xf32> to vector<8xf32>
    %110 = vector.shape_cast %109 : vector<8xf32> to vector<8x1xf32>
    %111 = vector.broadcast %110 : vector<8x1xf32> to vector<8x8xf32>
    %112 = arith.divf %108, %111 : vector<8x8xf32>
    %113 = arith.truncf %112 : vector<8x8xf32> to vector<8x8xbf16>
    %cst_41 = arith.constant dense<0.000000e+00> : vector<8x16xf32>
    %114 = tpu.matmul %113, %101, %cst_41 {dimension_numbers = #tpu.dot_dimension_numbers<[1], [0], [0], [1], [0, 0, 1, 1], [], []>} : vector<8x8xbf16>, vector<8x16xbf16>, vector<8x16xf32> -> vector<8x16xf32>
    %c0_42 = arith.constant 0 : index
    %c16 = arith.constant 16 : index
    %115 = vector.load %arg12[%c0_42, %c16] : memref<16x32xf32, #tpu.memory_space<vmem>>, vector<8x16xf32>
    tpu.vector_store %arg12[%c0_42, %c16], %114 {strides = array<i32>} : memref<16x32xf32, #tpu.memory_space<vmem>>, vector<8x16xf32>,
    %116 = vector.extract_strided_slice %75 {offsets = [8, 0], sizes = [8, 16], strides = [1, 1]} : vector<16x96xf32> to vector<8x16xf32>
    %117 = arith.truncf %116 : vector<8x16xf32> to vector<8x16xbf16>
    %118 = vector.extract_strided_slice %75 {offsets = [8, 32], sizes = [8, 16], strides = [1, 1]} : vector<16x96xf32> to vector<8x16xf32>
    %119 = arith.truncf %118 : vector<8x16xf32> to vector<8x16xbf16>
    %120 = vector.extract_strided_slice %75 {offsets = [8, 64], sizes = [8, 16], strides = [1, 1]} : vector<16x96xf32> to vector<8x16xf32>
    %121 = arith.truncf %120 : vector<8x16xf32> to vector<8x16xbf16>
    "tpu.trace_start"() <{level = 10 : i32, message = "qd,kd->qk"}> : () -> ()
    %cst_43 = arith.constant dense<0.000000e+00> : vector<8x8xf32>
    %122 = tpu.matmul %117, %119, %cst_43 {dimension_numbers = #tpu.dot_dimension_numbers<[1], [1], [0], [0], [0, 0, 1, 0], [], []>} : vector<8x16xbf16>, vector<8x16xbf16>, vector<8x8xf32> -> vector<8x8xf32>
    "tpu.trace_stop"() : () -> ()
    %123 = arith.addf %122, %20 : vector<8x8xf32>
    %cst_44 = arith.constant dense<0xFF800000> : vector<8xf32>
    %124 = vector.multi_reduction <maximumf>, %123, %cst_44 [1] : vector<8x8xf32> to vector<8xf32>
    %125 = vector.shape_cast %124 : vector<8xf32> to vector<8x1xf32>
    %126 = vector.broadcast %125 : vector<8x1xf32> to vector<8x8xf32>
    %127 = arith.subf %123, %126 : vector<8x8xf32>
    %128 = math.exp %127 : vector<8x8xf32>
    %cst_45 = arith.constant dense<0.000000e+00> : vector<8xf32>
    %129 = vector.multi_reduction <add>, %128, %cst_45 [1] : vector<8x8xf32> to vector<8xf32>
    %130 = vector.shape_cast %129 : vector<8xf32> to vector<8x1xf32>
    %131 = vector.broadcast %130 : vector<8x1xf32> to vector<8x8xf32>
    %132 = arith.divf %128, %131 : vector<8x8xf32>
    %133 = arith.truncf %132 : vector<8x8xf32> to vector<8x8xbf16>
    %cst_46 = arith.constant dense<0.000000e+00> : vector<8x16xf32>
    %134 = tpu.matmul %133, %121, %cst_46 {dimension_numbers = #tpu.dot_dimension_numbers<[1], [0], [0], [1], [0, 0, 1, 1], [], []>} : vector<8x8xbf16>, vector<8x16xbf16>, vector<8x16xf32> -> vector<8x16xf32>
    %c8 = arith.constant 8 : index
    %c0_47 = arith.constant 0 : index
    %135 = vector.load %arg12[%c8, %c0_47] : memref<16x32xf32, #tpu.memory_space<vmem>>, vector<8x16xf32>
    tpu.vector_store %arg12[%c8, %c0_47], %134 {strides = array<i32>} : memref<16x32xf32, #tpu.memory_space<vmem>>, vector<8x16xf32>,
    %136 = vector.extract_strided_slice %75 {offsets = [8, 16], sizes = [8, 16], strides = [1, 1]} : vector<16x96xf32> to vector<8x16xf32>
    %137 = arith.truncf %136 : vector<8x16xf32> to vector<8x16xbf16>
    %138 = vector.extract_strided_slice %75 {offsets = [8, 48], sizes = [8, 16], strides = [1, 1]} : vector<16x96xf32> to vector<8x16xf32>
    %139 = arith.truncf %138 : vector<8x16xf32> to vector<8x16xbf16>
    %140 = vector.extract_strided_slice %75 {offsets = [8, 80], sizes = [8, 16], strides = [1, 1]} : vector<16x96xf32> to vector<8x16xf32>
    %141 = arith.truncf %140 : vector<8x16xf32> to vector<8x16xbf16>
    "tpu.trace_start"() <{level = 10 : i32, message = "qd,kd->qk"}> : () -> ()
    %cst_48 = arith.constant dense<0.000000e+00> : vector<8x8xf32>
    %142 = tpu.matmul %137, %139, %cst_48 {dimension_numbers = #tpu.dot_dimension_numbers<[1], [1], [0], [0], [0, 0, 1, 0], [], []>} : vector<8x16xbf16>, vector<8x16xbf16>, vector<8x8xf32> -> vector<8x8xf32>
    "tpu.trace_stop"() : () -> ()
    %143 = arith.addf %142, %20 : vector<8x8xf32>
    %cst_49 = arith.constant dense<0xFF800000> : vector<8xf32>
    %144 = vector.multi_reduction <maximumf>, %143, %cst_49 [1] : vector<8x8xf32> to vector<8xf32>
    %145 = vector.shape_cast %144 : vector<8xf32> to vector<8x1xf32>
    %146 = vector.broadcast %145 : vector<8x1xf32> to vector<8x8xf32>
    %147 = arith.subf %143, %146 : vector<8x8xf32>
    %148 = math.exp %147 : vector<8x8xf32>
    %cst_50 = arith.constant dense<0.000000e+00> : vector<8xf32>
    %149 = vector.multi_reduction <add>, %148, %cst_50 [1] : vector<8x8xf32> to vector<8xf32>
    %150 = vector.shape_cast %149 : vector<8xf32> to vector<8x1xf32>
    %151 = vector.broadcast %150 : vector<8x1xf32> to vector<8x8xf32>
    %152 = arith.divf %148, %151 : vector<8x8xf32>
    %153 = arith.truncf %152 : vector<8x8xf32> to vector<8x8xbf16>
    %cst_51 = arith.constant dense<0.000000e+00> : vector<8x16xf32>
    %154 = tpu.matmul %153, %141, %cst_51 {dimension_numbers = #tpu.dot_dimension_numbers<[1], [0], [0], [1], [0, 0, 1, 1], [], []>} : vector<8x8xbf16>, vector<8x16xbf16>, vector<8x16xf32> -> vector<8x16xf32>
    %c8_52 = arith.constant 8 : index
    %c16_53 = arith.constant 16 : index
    %155 = vector.load %arg12[%c8_52, %c16_53] : memref<16x32xf32, #tpu.memory_space<vmem>>, vector<8x16xf32>
    tpu.vector_store %arg12[%c8_52, %c16_53], %154 {strides = array<i32>} : memref<16x32xf32, #tpu.memory_space<vmem>>, vector<8x16xf32>,
    %c0_54 = arith.constant 0 : index
    %c0_55 = arith.constant 0 : index
    %156 = vector.load %arg12[%c0_54, %c0_55] : memref<16x32xf32, #tpu.memory_space<vmem>>, vector<16x32xf32>
    %157 = arith.truncf %156 : vector<16x32xf32> to vector<16x32xbf16>
    %cst_56 = arith.constant dense<0.000000e+00> : vector<16x32xf32>
    %158 = tpu.matmul %157, %40, %cst_56 {dimension_numbers = #tpu.dot_dimension_numbers<[1], [0], [0], [1], [0, 0, 1, 1], [], []>} : vector<16x32xbf16>, vector<32x32xbf16>, vector<16x32xf32> -> vector<16x32xf32>
    %159 = arith.addf %0, %158 : vector<16x32xf32>
    %160 = vector.shape_cast %32 : vector<32xf32> to vector<1x32xf32>
    %161 = vector.broadcast %160 : vector<1x32xf32> to vector<16x32xf32>
    %162 = arith.addf %159, %161 : vector<16x32xf32>
    %cst_57 = arith.constant dense<0.000000e+00> : vector<16xf32>
    %163 = vector.multi_reduction <add>, %162, %cst_57 [1] : vector<16x32xf32> to vector<16xf32>
    %164 = vector.shape_cast %163 : vector<16xf32> to vector<16x1xf32>
    %cst_58 = arith.constant 3.200000e+01 : f32
    %165 = vector.broadcast %cst_58 : f32 to vector<16x1xf32>
    %166 = arith.divf %164, %165 : vector<16x1xf32>
    %167 = arith.mulf %162, %162 : vector<16x32xf32>
    %cst_59 = arith.constant dense<0.000000e+00> : vector<16xf32>
    %168 = vector.multi_reduction <add>, %167, %cst_59 [1] : vector<16x32xf32> to vector<16xf32>
    %169 = vector.shape_cast %168 : vector<16xf32> to vector<16x1xf32>
    %cst_60 = arith.constant 3.200000e+01 : f32
    %170 = vector.broadcast %cst_60 : f32 to vector<16x1xf32>
    %171 = arith.divf %169, %170 : vector<16x1xf32>
    %172 = arith.mulf %166, %166 : vector<16x1xf32>
    %173 = arith.subf %171, %172 : vector<16x1xf32>
    %174 = vector.broadcast %166 : vector<16x1xf32> to vector<16x32xf32>
    %175 = arith.subf %162, %174 : vector<16x32xf32>
    %cst_61 = arith.constant 9.99999974E-6 : f32
    %176 = vector.broadcast %cst_61 : f32 to vector<16x1xf32>
    %177 = arith.addf %173, %176 : vector<16x1xf32>
    %178 = math.rsqrt %177 : vector<16x1xf32>
    %179 = vector.broadcast %178 : vector<16x1xf32> to vector<16x32xf32>
    %180 = arith.mulf %175, %179 : vector<16x32xf32>
    %181 = vector.shape_cast %28 : vector<32xf32> to vector<1x32xf32>
    %182 = vector.broadcast %181 : vector<1x32xf32> to vector<16x32xf32>
    %183 = arith.mulf %180, %182 : vector<16x32xf32>
    %184 = vector.shape_cast %30 : vector<32xf32> to vector<1x32xf32>
    %185 = vector.broadcast %184 : vector<1x32xf32> to vector<16x32xf32>
    %186 = arith.addf %183, %185 : vector<16x32xf32>
    %187 = arith.truncf %186 : vector<16x32xf32> to vector<16x32xbf16>
    %cst_62 = arith.constant dense<0.000000e+00> : vector<16x128xf32>
    %188 = tpu.matmul %187, %42, %cst_62 {dimension_numbers = #tpu.dot_dimension_numbers<[1], [0], [0], [1], [0, 0, 1, 1], [], []>} : vector<16x32xbf16>, vector<32x128xbf16>, vector<16x128xf32> -> vector<16x128xf32>
    %189 = vector.shape_cast %44 : vector<128xf32> to vector<1x128xf32>
    %190 = vector.broadcast %189 : vector<1x128xf32> to vector<16x128xf32>
    %191 = arith.addf %188, %190 : vector<16x128xf32>
    %cst_63 = arith.constant 1.702000e+00 : f32
    %192 = vector.broadcast %cst_63 : f32 to vector<16x128xf32>
    %193 = arith.mulf %192, %191 : vector<16x128xf32>
    %194 = arith.negf %193 : vector<16x128xf32>
    %195 = math.exp %194 : vector<16x128xf32>
    %cst_64 = arith.constant 1.000000e+00 : f32
    %196 = vector.broadcast %cst_64 : f32 to vector<16x128xf32>
    %197 = arith.addf %196, %195 : vector<16x128xf32>
    %198 = arith.divf %196, %197 : vector<16x128xf32>
    %199 = arith.mulf %191, %198 : vector<16x128xf32>
    %200 = arith.truncf %199 : vector<16x128xf32> to vector<16x128xbf16>
    %cst_65 = arith.constant dense<0.000000e+00> : vector<16x32xf32>
    %201 = tpu.matmul %200, %46, %cst_65 {dimension_numbers = #tpu.dot_dimension_numbers<[1], [0], [0], [1], [0, 0, 1, 1], [], []>} : vector<16x128xbf16>, vector<128x32xbf16>, vector<16x32xf32> -> vector<16x32xf32>
    %202 = arith.addf %162, %201 : vector<16x32xf32>
    %203 = vector.shape_cast %34 : vector<32xf32> to vector<1x32xf32>
    %204 = vector.broadcast %203 : vector<1x32xf32> to vector<16x32xf32>
    %205 = arith.addf %202, %204 : vector<16x32xf32>
    %c1_66 = arith.constant 1 : index
    %c0_67 = arith.constant 0 : index
    %c0_68 = arith.constant 0 : index
    %206 = vector.load %arg9[%c1_66, %c0_67, %c0_68] : memref<2x6x32xf32, #tpu.memory_space<vmem>>, vector<1x6x32xf32>
    %207 = vector.shape_cast %206 : vector<1x6x32xf32> to vector<6x32xf32>
    %208 = vector.extract_strided_slice %207 {offsets = [0, 0], sizes = [1, 32], strides = [1, 1]} : vector<6x32xf32> to vector<1x32xf32>
    %209 = vector.shape_cast %208 : vector<1x32xf32> to vector<32xf32>
    %210 = vector.extract_strided_slice %207 {offsets = [1, 0], sizes = [1, 32], strides = [1, 1]} : vector<6x32xf32> to vector<1x32xf32>
    %211 = vector.shape_cast %210 : vector<1x32xf32> to vector<32xf32>
    %212 = vector.extract_strided_slice %207 {offsets = [2, 0], sizes = [1, 32], strides = [1, 1]} : vector<6x32xf32> to vector<1x32xf32>
    %213 = vector.shape_cast %212 : vector<1x32xf32> to vector<32xf32>
    %214 = vector.extract_strided_slice %207 {offsets = [3, 0], sizes = [1, 32], strides = [1, 1]} : vector<6x32xf32> to vector<1x32xf32>
    %215 = vector.shape_cast %214 : vector<1x32xf32> to vector<32xf32>
    %216 = vector.extract_strided_slice %207 {offsets = [4, 0], sizes = [1, 32], strides = [1, 1]} : vector<6x32xf32> to vector<1x32xf32>
    %217 = vector.shape_cast %216 : vector<1x32xf32> to vector<32xf32>
    %218 = vector.extract_strided_slice %207 {offsets = [5, 0], sizes = [1, 32], strides = [1, 1]} : vector<6x32xf32> to vector<1x32xf32>
    %219 = vector.shape_cast %218 : vector<1x32xf32> to vector<32xf32>
    %c1_69 = arith.constant 1 : index
    %c0_70 = arith.constant 0 : index
    %c0_71 = arith.constant 0 : index
    %220 = vector.load %arg3[%c1_69, %c0_70, %c0_71] : memref<2x32x96xbf16, #tpu.memory_space<vmem>>, vector<1x32x96xbf16>
    %221 = vector.shape_cast %220 : vector<1x32x96xbf16> to vector<32x96xbf16>
    %c1_72 = arith.constant 1 : index
    %c0_73 = arith.constant 0 : index
    %222 = vector.load %arg4[%c1_72, %c0_73] : memref<2x96xf32, #tpu.memory_space<vmem>>, vector<1x96xf32>
    %223 = vector.shape_cast %222 : vector<1x96xf32> to vector<96xf32>
    %c1_74 = arith.constant 1 : index
    %c0_75 = arith.constant 0 : index
    %c0_76 = arith.constant 0 : index
    %224 = vector.load %arg5[%c1_74, %c0_75, %c0_76] : memref<2x32x32xbf16, #tpu.memory_space<vmem>>, vector<1x32x32xbf16>
    %225 = vector.shape_cast %224 : vector<1x32x32xbf16> to vector<32x32xbf16>
    %c1_77 = arith.constant 1 : index
    %c0_78 = arith.constant 0 : index
    %c0_79 = arith.constant 0 : index
    %226 = vector.load %arg6[%c1_77, %c0_78, %c0_79] : memref<2x32x128xbf16, #tpu.memory_space<vmem>>, vector<1x32x128xbf16>
    %227 = vector.shape_cast %226 : vector<1x32x128xbf16> to vector<32x128xbf16>
    %c1_80 = arith.constant 1 : index
    %c0_81 = arith.constant 0 : index
    %228 = vector.load %arg7[%c1_80, %c0_81] : memref<2x128xf32, #tpu.memory_space<vmem>>, vector<1x128xf32>
    %229 = vector.shape_cast %228 : vector<1x128xf32> to vector<128xf32>
    %c1_82 = arith.constant 1 : index
    %c0_83 = arith.constant 0 : index
    %c0_84 = arith.constant 0 : index
    %230 = vector.load %arg8[%c1_82, %c0_83, %c0_84] : memref<2x128x32xbf16, #tpu.memory_space<vmem>>, vector<1x128x32xbf16>
    %231 = vector.shape_cast %230 : vector<1x128x32xbf16> to vector<128x32xbf16>
    %cst_85 = arith.constant dense<0.000000e+00> : vector<16xf32>
    %232 = vector.multi_reduction <add>, %205, %cst_85 [1] : vector<16x32xf32> to vector<16xf32>
    %233 = vector.shape_cast %232 : vector<16xf32> to vector<16x1xf32>
    %cst_86 = arith.constant 3.200000e+01 : f32
    %234 = vector.broadcast %cst_86 : f32 to vector<16x1xf32>
    %235 = arith.divf %233, %234 : vector<16x1xf32>
    %236 = arith.mulf %205, %205 : vector<16x32xf32>
    %cst_87 = arith.constant dense<0.000000e+00> : vector<16xf32>
    %237 = vector.multi_reduction <add>, %236, %cst_87 [1] : vector<16x32xf32> to vector<16xf32>
    %238 = vector.shape_cast %237 : vector<16xf32> to vector<16x1xf32>
    %cst_88 = arith.constant 3.200000e+01 : f32
    %239 = vector.broadcast %cst_88 : f32 to vector<16x1xf32>
    %240 = arith.divf %238, %239 : vector<16x1xf32>
    %241 = arith.mulf %235, %235 : vector<16x1xf32>
    %242 = arith.subf %240, %241 : vector<16x1xf32>
    %243 = vector.broadcast %235 : vector<16x1xf32> to vector<16x32xf32>
    %244 = arith.subf %205, %243 : vector<16x32xf32>
    %cst_89 = arith.constant 9.99999974E-6 : f32
    %245 = vector.broadcast %cst_89 : f32 to vector<16x1xf32>
    %246 = arith.addf %242, %245 : vector<16x1xf32>
    %247 = math.rsqrt %246 : vector<16x1xf32>
    %248 = vector.broadcast %247 : vector<16x1xf32> to vector<16x32xf32>
    %249 = arith.mulf %244, %248 : vector<16x32xf32>
    %250 = vector.shape_cast %209 : vector<32xf32> to vector<1x32xf32>
    %251 = vector.broadcast %250 : vector<1x32xf32> to vector<16x32xf32>
    %252 = arith.mulf %249, %251 : vector<16x32xf32>
    %253 = vector.shape_cast %211 : vector<32xf32> to vector<1x32xf32>
    %254 = vector.broadcast %253 : vector<1x32xf32> to vector<16x32xf32>
    %255 = arith.addf %252, %254 : vector<16x32xf32>
    %256 = arith.truncf %255 : vector<16x32xf32> to vector<16x32xbf16>
    %cst_90 = arith.constant dense<0.000000e+00> : vector<16x96xf32>
    %257 = tpu.matmul %256, %221, %cst_90 {dimension_numbers = #tpu.dot_dimension_numbers<[1], [0], [0], [1], [0, 0, 1, 1], [], []>} : vector<16x32xbf16>, vector<32x96xbf16>, vector<16x96xf32> -> vector<16x96xf32>
    %258 = vector.shape_cast %223 : vector<96xf32> to vector<1x96xf32>
    %259 = vector.broadcast %258 : vector<1x96xf32> to vector<16x96xf32>
    %260 = arith.addf %257, %259 : vector<16x96xf32>
    %261 = vector.extract_strided_slice %260 {offsets = [0, 0], sizes = [8, 16], strides = [1, 1]} : vector<16x96xf32> to vector<8x16xf32>
    %262 = arith.truncf %261 : vector<8x16xf32> to vector<8x16xbf16>
    %263 = vector.extract_strided_slice %260 {offsets = [0, 32], sizes = [8, 16], strides = [1, 1]} : vector<16x96xf32> to vector<8x16xf32>
    %264 = arith.truncf %263 : vector<8x16xf32> to vector<8x16xbf16>
    %265 = vector.extract_strided_slice %260 {offsets = [0, 64], sizes = [8, 16], strides = [1, 1]} : vector<16x96xf32> to vector<8x16xf32>
    %266 = arith.truncf %265 : vector<8x16xf32> to vector<8x16xbf16>
    "tpu.trace_start"() <{level = 10 : i32, message = "qd,kd->qk"}> : () -> ()
    %cst_91 = arith.constant dense<0.000000e+00> : vector<8x8xf32>
    %267 = tpu.matmul %262, %264, %cst_91 {dimension_numbers = #tpu.dot_dimension_numbers<[1], [1], [0], [0], [0, 0, 1, 0], [], []>} : vector<8x16xbf16>, vector<8x16xbf16>, vector<8x8xf32> -> vector<8x8xf32>
    "tpu.trace_stop"() : () -> ()
    %268 = arith.addf %267, %13 : vector<8x8xf32>
    %cst_92 = arith.constant dense<0xFF800000> : vector<8xf32>
    %269 = vector.multi_reduction <maximumf>, %268, %cst_92 [1] : vector<8x8xf32> to vector<8xf32>
    %270 = vector.shape_cast %269 : vector<8xf32> to vector<8x1xf32>
    %271 = vector.broadcast %270 : vector<8x1xf32> to vector<8x8xf32>
    %272 = arith.subf %268, %271 : vector<8x8xf32>
    %273 = math.exp %272 : vector<8x8xf32>
    %cst_93 = arith.constant dense<0.000000e+00> : vector<8xf32>
    %274 = vector.multi_reduction <add>, %273, %cst_93 [1] : vector<8x8xf32> to vector<8xf32>
    %275 = vector.shape_cast %274 : vector<8xf32> to vector<8x1xf32>
    %276 = vector.broadcast %275 : vector<8x1xf32> to vector<8x8xf32>
    %277 = arith.divf %273, %276 : vector<8x8xf32>
    %278 = arith.truncf %277 : vector<8x8xf32> to vector<8x8xbf16>
    %cst_94 = arith.constant dense<0.000000e+00> : vector<8x16xf32>
    %279 = tpu.matmul %278, %266, %cst_94 {dimension_numbers = #tpu.dot_dimension_numbers<[1], [0], [0], [1], [0, 0, 1, 1], [], []>} : vector<8x8xbf16>, vector<8x16xbf16>, vector<8x16xf32> -> vector<8x16xf32>
    %c0_95 = arith.constant 0 : index
    %c0_96 = arith.constant 0 : index
    %280 = vector.load %arg12[%c0_95, %c0_96] : memref<16x32xf32, #tpu.memory_space<vmem>>, vector<8x16xf32>
    tpu.vector_store %arg12[%c0_95, %c0_96], %279 {strides = array<i32>} : memref<16x32xf32, #tpu.memory_space<vmem>>, vector<8x16xf32>,
    %281 = vector.extract_strided_slice %260 {offsets = [0, 16], sizes = [8, 16], strides = [1, 1]} : vector<16x96xf32> to vector<8x16xf32>
    %282 = arith.truncf %281 : vector<8x16xf32> to vector<8x16xbf16>
    %283 = vector.extract_strided_slice %260 {offsets = [0, 48], sizes = [8, 16], strides = [1, 1]} : vector<16x96xf32> to vector<8x16xf32>
    %284 = arith.truncf %283 : vector<8x16xf32> to vector<8x16xbf16>
    %285 = vector.extract_strided_slice %260 {offsets = [0, 80], sizes = [8, 16], strides = [1, 1]} : vector<16x96xf32> to vector<8x16xf32>
    %286 = arith.truncf %285 : vector<8x16xf32> to vector<8x16xbf16>
    "tpu.trace_start"() <{level = 10 : i32, message = "qd,kd->qk"}> : () -> ()
    %cst_97 = arith.constant dense<0.000000e+00> : vector<8x8xf32>
    %287 = tpu.matmul %282, %284, %cst_97 {dimension_numbers = #tpu.dot_dimension_numbers<[1], [1], [0], [0], [0, 0, 1, 0], [], []>} : vector<8x16xbf16>, vector<8x16xbf16>, vector<8x8xf32> -> vector<8x8xf32>
    "tpu.trace_stop"() : () -> ()
    %288 = arith.addf %287, %13 : vector<8x8xf32>
    %cst_98 = arith.constant dense<0xFF800000> : vector<8xf32>
    %289 = vector.multi_reduction <maximumf>, %288, %cst_98 [1] : vector<8x8xf32> to vector<8xf32>
    %290 = vector.shape_cast %289 : vector<8xf32> to vector<8x1xf32>
    %291 = vector.broadcast %290 : vector<8x1xf32> to vector<8x8xf32>
    %292 = arith.subf %288, %291 : vector<8x8xf32>
    %293 = math.exp %292 : vector<8x8xf32>
    %cst_99 = arith.constant dense<0.000000e+00> : vector<8xf32>
    %294 = vector.multi_reduction <add>, %293, %cst_99 [1] : vector<8x8xf32> to vector<8xf32>
    %295 = vector.shape_cast %294 : vector<8xf32> to vector<8x1xf32>
    %296 = vector.broadcast %295 : vector<8x1xf32> to vector<8x8xf32>
    %297 = arith.divf %293, %296 : vector<8x8xf32>
    %298 = arith.truncf %297 : vector<8x8xf32> to vector<8x8xbf16>
    %cst_100 = arith.constant dense<0.000000e+00> : vector<8x16xf32>
    %299 = tpu.matmul %298, %286, %cst_100 {dimension_numbers = #tpu.dot_dimension_numbers<[1], [0], [0], [1], [0, 0, 1, 1], [], []>} : vector<8x8xbf16>, vector<8x16xbf16>, vector<8x16xf32> -> vector<8x16xf32>
    %c0_101 = arith.constant 0 : index
    %c16_102 = arith.constant 16 : index
    %300 = vector.load %arg12[%c0_101, %c16_102] : memref<16x32xf32, #tpu.memory_space<vmem>>, vector<8x16xf32>
    tpu.vector_store %arg12[%c0_101, %c16_102], %299 {strides = array<i32>} : memref<16x32xf32, #tpu.memory_space<vmem>>, vector<8x16xf32>,
    %301 = vector.extract_strided_slice %260 {offsets = [8, 0], sizes = [8, 16], strides = [1, 1]} : vector<16x96xf32> to vector<8x16xf32>
    %302 = arith.truncf %301 : vector<8x16xf32> to vector<8x16xbf16>
    %303 = vector.extract_strided_slice %260 {offsets = [8, 32], sizes = [8, 16], strides = [1, 1]} : vector<16x96xf32> to vector<8x16xf32>
    %304 = arith.truncf %303 : vector<8x16xf32> to vector<8x16xbf16>
    %305 = vector.extract_strided_slice %260 {offsets = [8, 64], sizes = [8, 16], strides = [1, 1]} : vector<16x96xf32> to vector<8x16xf32>
    %306 = arith.truncf %305 : vector<8x16xf32> to vector<8x16xbf16>
    "tpu.trace_start"() <{level = 10 : i32, message = "qd,kd->qk"}> : () -> ()
    %cst_103 = arith.constant dense<0.000000e+00> : vector<8x8xf32>
    %307 = tpu.matmul %302, %304, %cst_103 {dimension_numbers = #tpu.dot_dimension_numbers<[1], [1], [0], [0], [0, 0, 1, 0], [], []>} : vector<8x16xbf16>, vector<8x16xbf16>, vector<8x8xf32> -> vector<8x8xf32>
    "tpu.trace_stop"() : () -> ()
    %308 = arith.addf %307, %20 : vector<8x8xf32>
    %cst_104 = arith.constant dense<0xFF800000> : vector<8xf32>
    %309 = vector.multi_reduction <maximumf>, %308, %cst_104 [1] : vector<8x8xf32> to vector<8xf32>
    %310 = vector.shape_cast %309 : vector<8xf32> to vector<8x1xf32>
    %311 = vector.broadcast %310 : vector<8x1xf32> to vector<8x8xf32>
    %312 = arith.subf %308, %311 : vector<8x8xf32>
    %313 = math.exp %312 : vector<8x8xf32>
    %cst_105 = arith.constant dense<0.000000e+00> : vector<8xf32>
    %314 = vector.multi_reduction <add>, %313, %cst_105 [1] : vector<8x8xf32> to vector<8xf32>
    %315 = vector.shape_cast %314 : vector<8xf32> to vector<8x1xf32>
    %316 = vector.broadcast %315 : vector<8x1xf32> to vector<8x8xf32>
    %317 = arith.divf %313, %316 : vector<8x8xf32>
    %318 = arith.truncf %317 : vector<8x8xf32> to vector<8x8xbf16>
    %cst_106 = arith.constant dense<0.000000e+00> : vector<8x16xf32>
    %319 = tpu.matmul %318, %306, %cst_106 {dimension_numbers = #tpu.dot_dimension_numbers<[1], [0], [0], [1], [0, 0, 1, 1], [], []>} : vector<8x8xbf16>, vector<8x16xbf16>, vector<8x16xf32> -> vector<8x16xf32>
    %c8_107 = arith.constant 8 : index
    %c0_108 = arith.constant 0 : index
    %320 = vector.load %arg12[%c8_107, %c0_108] : memref<16x32xf32, #tpu.memory_space<vmem>>, vector<8x16xf32>
    tpu.vector_store %arg12[%c8_107, %c0_108], %319 {strides = array<i32>} : memref<16x32xf32, #tpu.memory_space<vmem>>, vector<8x16xf32>,
    %321 = vector.extract_strided_slice %260 {offsets = [8, 16], sizes = [8, 16], strides = [1, 1]} : vector<16x96xf32> to vector<8x16xf32>
    %322 = arith.truncf %321 : vector<8x16xf32> to vector<8x16xbf16>
    %323 = vector.extract_strided_slice %260 {offsets = [8, 48], sizes = [8, 16], strides = [1, 1]} : vector<16x96xf32> to vector<8x16xf32>
    %324 = arith.truncf %323 : vector<8x16xf32> to vector<8x16xbf16>
    %325 = vector.extract_strided_slice %260 {offsets = [8, 80], sizes = [8, 16], strides = [1, 1]} : vector<16x96xf32> to vector<8x16xf32>
    %326 = arith.truncf %325 : vector<8x16xf32> to vector<8x16xbf16>
    "tpu.trace_start"() <{level = 10 : i32, message = "qd,kd->qk"}> : () -> ()
    %cst_109 = arith.constant dense<0.000000e+00> : vector<8x8xf32>
    %327 = tpu.matmul %322, %324, %cst_109 {dimension_numbers = #tpu.dot_dimension_numbers<[1], [1], [0], [0], [0, 0, 1, 0], [], []>} : vector<8x16xbf16>, vector<8x16xbf16>, vector<8x8xf32> -> vector<8x8xf32>
    "tpu.trace_stop"() : () -> ()
    %328 = arith.addf %327, %20 : vector<8x8xf32>
    %cst_110 = arith.constant dense<0xFF800000> : vector<8xf32>
    %329 = vector.multi_reduction <maximumf>, %328, %cst_110 [1] : vector<8x8xf32> to vector<8xf32>
    %330 = vector.shape_cast %329 : vector<8xf32> to vector<8x1xf32>
    %331 = vector.broadcast %330 : vector<8x1xf32> to vector<8x8xf32>
    %332 = arith.subf %328, %331 : vector<8x8xf32>
    %333 = math.exp %332 : vector<8x8xf32>
    %cst_111 = arith.constant dense<0.000000e+00> : vector<8xf32>
    %334 = vector.multi_reduction <add>, %333, %cst_111 [1] : vector<8x8xf32> to vector<8xf32>
    %335 = vector.shape_cast %334 : vector<8xf32> to vector<8x1xf32>
    %336 = vector.broadcast %335 : vector<8x1xf32> to vector<8x8xf32>
    %337 = arith.divf %333, %336 : vector<8x8xf32>
    %338 = arith.truncf %337 : vector<8x8xf32> to vector<8x8xbf16>
    %cst_112 = arith.constant dense<0.000000e+00> : vector<8x16xf32>
    %339 = tpu.matmul %338, %326, %cst_112 {dimension_numbers = #tpu.dot_dimension_numbers<[1], [0], [0], [1], [0, 0, 1, 1], [], []>} : vector<8x8xbf16>, vector<8x16xbf16>, vector<8x16xf32> -> vector<8x16xf32>
    %c8_113 = arith.constant 8 : index
    %c16_114 = arith.constant 16 : index
    %340 = vector.load %arg12[%c8_113, %c16_114] : memref<16x32xf32, #tpu.memory_space<vmem>>, vector<8x16xf32>
    tpu.vector_store %arg12[%c8_113, %c16_114], %339 {strides = array<i32>} : memref<16x32xf32, #tpu.memory_space<vmem>>, vector<8x16xf32>,
    %c0_115 = arith.constant 0 : index
    %c0_116 = arith.constant 0 : index
    %341 = vector.load %arg12[%c0_115, %c0_116] : memref<16x32xf32, #tpu.memory_space<vmem>>, vector<16x32xf32>
    %342 = arith.truncf %341 : vector<16x32xf32> to vector<16x32xbf16>
    %cst_117 = arith.constant dense<0.000000e+00> : vector<16x32xf32>
    %343 = tpu.matmul %342, %225, %cst_117 {dimension_numbers = #tpu.dot_dimension_numbers<[1], [0], [0], [1], [0, 0, 1, 1], [], []>} : vector<16x32xbf16>, vector<32x32xbf16>, vector<16x32xf32> -> vector<16x32xf32>
    %344 = arith.addf %205, %343 : vector<16x32xf32>
    %345 = vector.shape_cast %217 : vector<32xf32> to vector<1x32xf32>
    %346 = vector.broadcast %345 : vector<1x32xf32> to vector<16x32xf32>
    %347 = arith.addf %344, %346 : vector<16x32xf32>
    %cst_118 = arith.constant dense<0.000000e+00> : vector<16xf32>
    %348 = vector.multi_reduction <add>, %347, %cst_118 [1] : vector<16x32xf32> to vector<16xf32>
    %349 = vector.shape_cast %348 : vector<16xf32> to vector<16x1xf32>
    %cst_119 = arith.constant 3.200000e+01 : f32
    %350 = vector.broadcast %cst_119 : f32 to vector<16x1xf32>
    %351 = arith.divf %349, %350 : vector<16x1xf32>
    %352 = arith.mulf %347, %347 : vector<16x32xf32>
    %cst_120 = arith.constant dense<0.000000e+00> : vector<16xf32>
    %353 = vector.multi_reduction <add>, %352, %cst_120 [1] : vector<16x32xf32> to vector<16xf32>
    %354 = vector.shape_cast %353 : vector<16xf32> to vector<16x1xf32>
    %cst_121 = arith.constant 3.200000e+01 : f32
    %355 = vector.broadcast %cst_121 : f32 to vector<16x1xf32>
    %356 = arith.divf %354, %355 : vector<16x1xf32>
    %357 = arith.mulf %351, %351 : vector<16x1xf32>
    %358 = arith.subf %356, %357 : vector<16x1xf32>
    %359 = vector.broadcast %351 : vector<16x1xf32> to vector<16x32xf32>
    %360 = arith.subf %347, %359 : vector<16x32xf32>
    %cst_122 = arith.constant 9.99999974E-6 : f32
    %361 = vector.broadcast %cst_122 : f32 to vector<16x1xf32>
    %362 = arith.addf %358, %361 : vector<16x1xf32>
    %363 = math.rsqrt %362 : vector<16x1xf32>
    %364 = vector.broadcast %363 : vector<16x1xf32> to vector<16x32xf32>
    %365 = arith.mulf %360, %364 : vector<16x32xf32>
    %366 = vector.shape_cast %213 : vector<32xf32> to vector<1x32xf32>
    %367 = vector.broadcast %366 : vector<1x32xf32> to vector<16x32xf32>
    %368 = arith.mulf %365, %367 : vector<16x32xf32>
    %369 = vector.shape_cast %215 : vector<32xf32> to vector<1x32xf32>
    %370 = vector.broadcast %369 : vector<1x32xf32> to vector<16x32xf32>
    %371 = arith.addf %368, %370 : vector<16x32xf32>
    %372 = arith.truncf %371 : vector<16x32xf32> to vector<16x32xbf16>
    %cst_123 = arith.constant dense<0.000000e+00> : vector<16x128xf32>
    %373 = tpu.matmul %372, %227, %cst_123 {dimension_numbers = #tpu.dot_dimension_numbers<[1], [0], [0], [1], [0, 0, 1, 1], [], []>} : vector<16x32xbf16>, vector<32x128xbf16>, vector<16x128xf32> -> vector<16x128xf32>
    %374 = vector.shape_cast %229 : vector<128xf32> to vector<1x128xf32>
    %375 = vector.broadcast %374 : vector<1x128xf32> to vector<16x128xf32>
    %376 = arith.addf %373, %375 : vector<16x128xf32>
    %cst_124 = arith.constant 1.702000e+00 : f32
    %377 = vector.broadcast %cst_124 : f32 to vector<16x128xf32>
    %378 = arith.mulf %377, %376 : vector<16x128xf32>
    %379 = arith.negf %378 : vector<16x128xf32>
    %380 = math.exp %379 : vector<16x128xf32>
    %cst_125 = arith.constant 1.000000e+00 : f32
    %381 = vector.broadcast %cst_125 : f32 to vector<16x128xf32>
    %382 = arith.addf %381, %380 : vector<16x128xf32>
    %383 = arith.divf %381, %382 : vector<16x128xf32>
    %384 = arith.mulf %376, %383 : vector<16x128xf32>
    %385 = arith.truncf %384 : vector<16x128xf32> to vector<16x128xbf16>
    %cst_126 = arith.constant dense<0.000000e+00> : vector<16x32xf32>
    %386 = tpu.matmul %385, %231, %cst_126 {dimension_numbers = #tpu.dot_dimension_numbers<[1], [0], [0], [1], [0, 0, 1, 1], [], []>} : vector<16x128xbf16>, vector<128x32xbf16>, vector<16x32xf32> -> vector<16x32xf32>
    %387 = arith.addf %347, %386 : vector<16x32xf32>
    %388 = vector.shape_cast %219 : vector<32xf32> to vector<1x32xf32>
    %389 = vector.broadcast %388 : vector<1x32xf32> to vector<16x32xf32>
    %390 = arith.addf %387, %389 : vector<16x32xf32>
    %c0_127 = arith.constant 0 : index
    %c0_128 = arith.constant 0 : index
    %391 = vector.load %arg10[%c0_127, %c0_128] : memref<2x32xf32, #tpu.memory_space<vmem>>, vector<1x32xf32>
    %392 = vector.shape_cast %391 : vector<1x32xf32> to vector<32xf32>
    %c1_129 = arith.constant 1 : index
    %c0_130 = arith.constant 0 : index
    %393 = vector.load %arg10[%c1_129, %c0_130] : memref<2x32xf32, #tpu.memory_space<vmem>>, vector<1x32xf32>
    %394 = vector.shape_cast %393 : vector<1x32xf32> to vector<32xf32>
    %cst_131 = arith.constant dense<0.000000e+00> : vector<16xf32>
    %395 = vector.multi_reduction <add>, %390, %cst_131 [1] : vector<16x32xf32> to vector<16xf32>
    %396 = vector.shape_cast %395 : vector<16xf32> to vector<16x1xf32>
    %cst_132 = arith.constant 3.200000e+01 : f32
    %397 = vector.broadcast %cst_132 : f32 to vector<16x1xf32>
    %398 = arith.divf %396, %397 : vector<16x1xf32>
    %399 = arith.mulf %390, %390 : vector<16x32xf32>
    %cst_133 = arith.constant dense<0.000000e+00> : vector<16xf32>
    %400 = vector.multi_reduction <add>, %399, %cst_133 [1] : vector<16x32xf32> to vector<16xf32>
    %401 = vector.shape_cast %400 : vector<16xf32> to vector<16x1xf32>
    %cst_134 = arith.constant 3.200000e+01 : f32
    %402 = vector.broadcast %cst_134 : f32 to vector<16x1xf32>
    %403 = arith.divf %401, %402 : vector<16x1xf32>
    %404 = arith.mulf %398, %398 : vector<16x1xf32>
    %405 = arith.subf %403, %404 : vector<16x1xf32>
    %406 = vector.broadcast %398 : vector<16x1xf32> to vector<16x32xf32>
    %407 = arith.subf %390, %406 : vector<16x32xf32>
    %cst_135 = arith.constant 9.99999974E-6 : f32
    %408 = vector.broadcast %cst_135 : f32 to vector<16x1xf32>
    %409 = arith.addf %405, %408 : vector<16x1xf32>
    %410 = math.rsqrt %409 : vector<16x1xf32>
    %411 = vector.broadcast %410 : vector<16x1xf32> to vector<16x32xf32>
    %412 = arith.mulf %407, %411 : vector<16x32xf32>
    %413 = vector.shape_cast %392 : vector<32xf32> to vector<1x32xf32>
    %414 = vector.broadcast %413 : vector<1x32xf32> to vector<16x32xf32>
    %415 = arith.mulf %412, %414 : vector<16x32xf32>
    %416 = vector.shape_cast %394 : vector<32xf32> to vector<1x32xf32>
    %417 = vector.broadcast %416 : vector<1x32xf32> to vector<16x32xf32>
    %418 = arith.addf %415, %417 : vector<16x32xf32>
    %c0_136 = arith.constant 0 : index
    %c0_137 = arith.constant 0 : index
    %419 = vector.load %arg11[%c0_136, %c0_137] : memref<16x32xf32, #tpu.memory_space<vmem>>, vector<16x32xf32>
    tpu.vector_store %arg11[%c0_136, %c0_137], %418 {strides = array<i32>} : memref<16x32xf32, #tpu.memory_space<vmem>>, vector<16x32xf32>,
    return
  }
  func.func @transform_0(%arg0: i32, %arg1: memref<2xi32, #tpu.memory_space<smem>>) -> (i32, i32) {
    %c0_i32 = arith.constant 0 : i32
    %c0_i32_0 = arith.constant 0 : i32
    %c0_i32_1 = arith.constant 0 : i32
    return %c0_i32, %c0_i32_0 : i32, i32
  }
  func.func @transform_1(%arg0: i32, %arg1: memref<2xi32, #tpu.memory_space<smem>>) -> (i32, i32, i32) {
    %c0_i32 = arith.constant 0 : i32
    %c0_i32_0 = arith.constant 0 : i32
    %c0_i32_1 = arith.constant 0 : i32
    %c0_i32_2 = arith.constant 0 : i32
    return %c0_i32, %c0_i32_0, %c0_i32_1 : i32, i32, i32
  }
  func.func @transform_2(%arg0: i32, %arg1: memref<2xi32, #tpu.memory_space<smem>>) -> (i32, i32) {
    %c0_i32 = arith.constant 0 : i32
    %c0_i32_0 = arith.constant 0 : i32
    %c0_i32_1 = arith.constant 0 : i32
    return %c0_i32, %c0_i32_0 : i32, i32
  }
  func.func @transform_3(%arg0: i32, %arg1: memref<2xi32, #tpu.memory_space<smem>>) -> (i32, i32, i32) {
    %c0_i32 = arith.constant 0 : i32
    %c0_i32_0 = arith.constant 0 : i32
    %c0_i32_1 = arith.constant 0 : i32
    %c0_i32_2 = arith.constant 0 : i32
    return %c0_i32, %c0_i32_0, %c0_i32_1 : i32, i32, i32
  }
  func.func @transform_4(%arg0: i32, %arg1: memref<2xi32, #tpu.memory_space<smem>>) -> (i32, i32, i32) {
    %c0_i32 = arith.constant 0 : i32
    %c0_i32_0 = arith.constant 0 : i32
    %c0_i32_1 = arith.constant 0 : i32
    %c0_i32_2 = arith.constant 0 : i32
    return %c0_i32, %c0_i32_0, %c0_i32_1 : i32, i32, i32
  }
  func.func @transform_5(%arg0: i32, %arg1: memref<2xi32, #tpu.memory_space<smem>>) -> (i32, i32) {
    %c0_i32 = arith.constant 0 : i32
    %c0_i32_0 = arith.constant 0 : i32
    %c0_i32_1 = arith.constant 0 : i32
    return %c0_i32, %c0_i32_0 : i32, i32
  }
  func.func @transform_6(%arg0: i32, %arg1: memref<2xi32, #tpu.memory_space<smem>>) -> (i32, i32, i32) {
    %c0_i32 = arith.constant 0 : i32
    %c0_i32_0 = arith.constant 0 : i32
    %c0_i32_1 = arith.constant 0 : i32
    %c0_i32_2 = arith.constant 0 : i32
    return %c0_i32, %c0_i32_0, %c0_i32_1 : i32, i32, i32
  }
  func.func @transform_7(%arg0: i32, %arg1: memref<2xi32, #tpu.memory_space<smem>>) -> (i32, i32, i32) {
    %c0_i32 = arith.constant 0 : i32
    %c0_i32_0 = arith.constant 0 : i32
    %c0_i32_1 = arith.constant 0 : i32
    %c0_i32_2 = arith.constant 0 : i32
    return %c0_i32, %c0_i32_0, %c0_i32_1 : i32, i32, i32
  }
  func.func @transform_8(%arg0: i32, %arg1: memref<2xi32, #tpu.memory_space<smem>>) -> (i32, i32) {
    %c0_i32 = arith.constant 0 : i32
    %c0_i32_0 = arith.constant 0 : i32
    %c0_i32_1 = arith.constant 0 : i32
    return %c0_i32, %c0_i32_0 : i32, i32
  }
  func.func @transform_9(%arg0: i32, %arg1: memref<2xi32, #tpu.memory_space<smem>>) -> (i32, i32) {
    %c0_i32 = arith.constant 0 : i32
    %c0_i32_0 = arith.constant 0 : i32
    %c0_i32_1 = arith.constant 0 : i32
    return %c0_i32, %c0_i32_0 : i32, i32
  }
}

</mosaic_0001>

<bundles_post_ra>
// kernel: tpu_custom_call.1
= control target key start
LH: loop header
LB: loop body
LE: loop exit
PB: predicated region body
PF: predicated region fallthrough
CT: control target
= control target key end

     0   :  { %s2908_s0 = inlined_call_operand.vmem [shape: s32[2], index: 0, kind: input, shape index: {}]   ;;  %s2909_s1 = inlined_call_operand.vmem [shape: f32[16,32], index: 1, kind: input, shape index: {}]   ;;  %s2910_s2 = inlined_call_operand.vmem [shape: bf16[2,32,96], index: 2, kind: input, shape index: {}]   ;;  %s2911_s3 = inlined_call_operand.vmem [shape: f32[2,96], index: 3, kind: input, shape index: {}]   ;;  %s2912_s4 = inlined_call_operand.vmem [shape: bf16[2,32,32], index: 4, kind: input, shape index: {}]   ;;  %s2913_s5 = inlined_call_operand.vmem [shape: bf16[2,32,128], index: 5, kind: input, shape index: {}]   ;;  %s2914_s6 = inlined_call_operand.vmem [shape: f32[2,128], index: 6, kind: input, shape index: {}]   ;;  %s2915_s7 = inlined_call_operand.vmem [shape: bf16[2,128,32], index: 7, kind: input, shape index: {}]   ;;  %s2916_s8 = inlined_call_operand.vmem [shape: f32[2,6,32], index: 8, kind: input, shape index: {}]   ;;  %s2917_s9 = inlined_call_operand.vmem [shape: f32[2,32], index: 9, kind: input, shape index: {}]   ;;  %s2918_s10 = inlined_call_operand.hbm [shape: f32[16,32], index: 10, kind: output, shape index: {}]  }
   0x1   :  { %s15_s15 = sshll.u32 %s2908_s0, 4  ;;  %s16_s15 = int_to_ptr.vmem [resolvable:$true] %s15_s15 }
   0x2   :  { %s2323_s16 = scalar_lea.vmem %s16_s15, 16  ;;  %p2328_p1 = scmp.lt.s32.totalorder %s16_s15, %s16_s15 }
   0x3   :  { %p2324_p0 = scmp.ne.s32.totalorder %s16_s15, %s2323_s16  ;;  %p2329_p2 = scmp.lt.s32.totalorder %s2323_s16, %s2323_s16 }
   0x5   :  { %p2330_p3 = por %p2329_p2, %p2328_p1 }
   0x7   :  { %p2331_p4 = pnand %p2330_p3, %p2324_p0 }
   0x9   :  { %2334 = shalt.err (!%p2331_p4)  }
   0xa   :  { %s2359_s17 = smov [#allocation4]  }
   0xb   :  { %18 = dma.vmem_to_smem %s16_s15, 16, %s2359_s17, [#allocation3] }
   0xc   :  { %2355 = dma.done.wait [#allocation3], 16 }
   0xd   :  { %2356 = vsyncadd [#allocation3], 4294967280 }
   0xe   :  { %20 = sfence }
   0xf   :  { %v2433_v0 = vld [vmem:[%s2909_s1] sm:$0xff]  ;;  %vm90_vm0 = vcmask 261120   ;;  %v2438_v1 = vld [vmem:[%s2909_s1 + $0x8] sm:$0xff] }
  0x10   :  { %v91_v2 = vsel %vm90_vm0, %v2433_v0, 0.0  ;;  %v100_v3 = vmul.f32 %v2433_v0, %v2433_v0  ;;  %v94_v4 = vsel %vm90_vm0, %v2438_v1, 0.0  ;;  %v101_v5 = vmul.f32 %v2438_v1, %v2438_v1 }
  0x11   :  { %92 = vadd.xlane.f32.xlu0 %v91_v2 }
  0x12   :  { %v102_v6 = vsel %vm90_vm0, %v100_v3, 0.0  ;;  %v105_v7 = vsel %vm90_vm0, %v101_v5, 0.0 }
  0x13   :  { %103 = vadd.xlane.f32.xlu1 %v102_v6 }
  0x15   :  { %95 = vadd.xlane.f32.xlu0 %v94_v4 }
  0x17   :  { %106 = vadd.xlane.f32.xlu1 %v105_v7 }
  0x18   :  { %21 = vsyncpa [#allocation6], 0  ;;  %v2227_v8 = vld [vmem:[%s2910_s2 + $0x8] sm:$0xff]   ;;  %v2360_v9 = vmov 0.0   ;;  %vm2361_vm1 = vmmov 0   ;;  %v2228_v10 = vld [vmem:[%s2910_s2] sm:$0xff]   ;;  %v43_v25 = vlaneseq }
  0x19   :  { %2030 = vmatprep.subr.bf16.mxu1 %v2360_v9  ;;  %2034 = vmatprep.mubr.msk.bf16.mxu1 %vm2361_vm1, %v2360_v9  ;;  %v2470_v28 = vld [vmem:[%s2916_s8] sm:$0x3f]  ;;  %s2362_s28 = smov 96   ;;  %s2363_s29 = smov 80   ;;  %vm199_vm2 = vcmask 130048   ;;  %vm246_vm5 = vcmask 64512  }
  0x1a   :  { %2031 = vmatpush3.bf16.msra.mxu1 %v2227_v8  ;;  %2056 = vmatprep.subr.bf16.mxu0 %v2360_v9  ;;  %v2464_v26 = vshrl.u32 %v43_v25, 7  ;;  %v1873_v43 = vld [vmem:[%s2911_s3] ss:$0 sm:$0xff]  ;;  %s2364_s30 = smov 112   ;;  %s49_s11 = sld [smem:[#allocation4]]  ;;  %v2505_v54 = vand.u32 127, %v43_v25 }
  0x1b   :  { %2032 = vmatprep.subr.bf16.mxu1 %v2360_v9  ;;  %2058 = vmatprep.mubr.msk.bf16.mxu0 %vm2361_vm1, %v2360_v9  ;;  %v2365_v56 = vmov -1e+09   ;;  %s2366_s12 = smov 64   ;;  %vm264_vm6 = vcmask 1043456   ;;  %s1872_s13 = sld [smem:[#allocation4 + $0x1]]  ;;  %vm423_vm8 = vcmask 261248  }
  0x1c   :  { %v124_v27 = vsub.s32 0, %v2464_v26  ;;  %v130_v33 = vsub.s32 1, %v2464_v26  ;;  %vm47_vm3 = vcmp.le.s32.totalorder %v2505_v54, %v2464_v26  ;;  %s2367_s14 = smov 48   ;;  %s2368_s15 = smov 16  }
  0x1d   :  { %v2511_v57 = vsel %vm47_vm3, 0.0, %v2365_v56 }
  0x1e   :  { %2033 = vmatpush3.bf16.msra.mxu1 %v2228_v10  ;;  %v125_v32 = vrot.slane %v2470_v28, %v124_v27  ;;  %v131_v38 = vrot.slane %v2470_v28, %v130_v33 }
  0x1f   :  { %2038 = vmatprep.subr.bf16.mxu1 %v2360_v9 }
  0x20   :  { %v50_v55 = vstv %s49_s11 }
  0x21   :  { %vm51_vm4 = vcmp.lt.s32.totalorder %v2505_v54, %v50_v55 }
  0x22   :  { %v52_v58 = vsel %vm51_vm4, 0.0, %v2365_v56 }
  0x23   :  { %v2515_v59 = vadd.f32 %v52_v58, %v2511_v57 }
  0x9a   :  { %v93_v11 = vpop.xlane.xlu0 %92 }
  0x9b   :  { %v98_v12 = vmul.f32 0.03125, %v93_v11 }
  0x9c   :  { %v104_v13 = vpop.xlane.xlu1 %103 }
  0x9d   :  { %v110_v14 = vmul.f32 %v98_v12, %v98_v12  ;;  %v108_v15 = vmul.f32 0.03125, %v104_v13  ;;  %v114_v29 = vsub.f32 %v2433_v0, %v98_v12 }
  0x9e   :  { %v96_v16 = vpop.xlane.xlu0 %95 }
  0x9f   :  { %v112_v17 = vsub.f32 %v108_v15, %v110_v14  ;;  %v99_v18 = vmul.f32 0.03125, %v96_v16 }
  0xa0   :  { %v107_v19 = vpop.xlane.xlu1 %106 }
  0xa1   :  { %v116_v20 = vadd.f32 1e-05, %v112_v17  ;;  %v111_v21 = vmul.f32 %v99_v18, %v99_v18  ;;  %v109_v22 = vmul.f32 0.03125, %v107_v19  ;;  %v115_v34 = vsub.f32 %v2438_v1, %v99_v18 }
  0xa3   :  { %2255 = vrsqrt.f32 %v116_v20  ;;  %v113_v23 = vsub.f32 %v109_v22, %v111_v21 }
  0xa5   :  { %v117_v24 = vadd.f32 1e-05, %v113_v23 }
  0xa7   :  { %2257 = vrsqrt.f32 %v117_v24 }
  0xb0   :  { %v2256_v30 = vpop.eup %2255 }
  0xb1   :  { %v120_v31 = vmul.f32 %v2256_v30, %v114_v29  ;;  %v55_v30 = vstv %s1872_s13 }
  0xb2   :  { %vm56_vm7 = vcmp.lt.s32.totalorder %v2505_v54, %v55_v30 }
  0xb3   :  { %v126_v37 = vmul.f32 %v125_v32, %v120_v31 }
  0xb4   :  { %v2258_v35 = vpop.eup %2257 }
  0xb5   :  { %v121_v36 = vmul.f32 %v2258_v35, %v115_v34  ;;  %v132_v40 = vadd.f32 %v131_v38, %v126_v37 }
  0xb7   :  { %v127_v39 = vmul.f32 %v125_v32, %v121_v36  ;;  %v57_v36 = vsel %vm56_vm7, 0.0, %v2365_v56 }
  0xb9   :  { %v133_v41 = vadd.f32 %v131_v38, %v127_v39  ;;  %v2553_v39 = vadd.f32 %v57_v36, %v2511_v57 }
  0xbb   :  { %v134_v42 = vpack.c.bf16 %v133_v41, %v132_v40 }
  0xbd   :  { %2035 = vmatmul.mubr.msk.bf16.vlgmr.msra.gmra.mxu1 %vm90_vm0, %v134_v42 }
  0xbe   :  { %2040 = vmatprep.mubr.msk.bf16.mxu1 %vm2361_vm1, %v2360_v9 }
 0x17d   :  { %v188_v44 = vpop.f32.mrf.mxu1 }
 0x17e   :  { %v189_v45 = vadd.f32 %v1873_v43, %v188_v44 }
 0x17f   :  { %v2036_v46 = vpop.f32.mrf.mxu1 }
 0x180   :  { %v2487_v47 = vpack.c.bf16 %v189_v45, %v189_v45 }
 0x181   :  { %v191_v48 = vpop.f32.mrf.mxu1 }
 0x182   :  { %197 = vrot.lane.b32.xlu0 %v2487_v47, %s2362_s28  ;;  %v192_v50 = vadd.f32 %v1873_v43, %v191_v48 }
 0x183   :  { %v2037_v49 = vpop.f32.mrf.mxu1 }
 0x184   :  { %v2493_v51 = vpack.c.bf16 %v192_v50, %v192_v50 }
 0x186   :  { %311 = vrot.lane.b32.xlu0 %v2487_v47, %s2363_s29 }
 0x18a   :  { %427 = vrot.lane.b32.xlu0 %v2493_v51, %s2362_s28 }
 0x18e   :  { %536 = vrot.lane.b32.xlu0 %v2493_v51, %s2364_s30 }
 0x1f4   :  { %v198_v52 = vpop.permute.xlu0 %197 }
 0x1f5   :  { %v204_v53 = vsel %vm199_vm2, %v198_v52, 0 }
 0x1f6   :  { %2039 = vmatpush3.bf16.xpose.msra.mxu1 %v204_v53 }
 0x1f7   :  { %2044 = vmatprep.subr.bf16.mxu1 %v2360_v9 }
 0x1f8   :  { %v312_v15 = vpop.permute.xlu0 %311 }
 0x1f9   :  { %v317_v17 = vsel %vm199_vm2, %v312_v15, 0 }
 0x1fc   :  { %v428_v18 = vpop.permute.xlu0 %427 }
 0x1fd   :  { %2041 = vmatmul.mubr.msk.bf16.vlgmr.msra.gmra.mxu1 %vm199_vm2, %v2487_v47  ;;  %v433_v20 = vsel %vm199_vm2, %v428_v18, 0 }
 0x1fe   :  { %2046 = vmatprep.mubr.msk.bf16.mxu1 %vm2361_vm1, %v2360_v9 }
 0x200   :  { %v537_v23 = vpop.permute.xlu0 %536 }
 0x2bd   :  { %v240_v60 = vpop.f32.mrf.mxu1 }
 0x2be   :  { %v241_v61 = vadd.f32 %v240_v60, %v2515_v59 }
 0x2bf   :  { %v2042_v62 = vpop.f32.mrf.mxu1 }
 0x2c0   :  { %v247_v63 = vsel %vm246_vm5, %v241_v61, -inf }
 0x2c1   :  { %248 = vmax.xlane.f32.xlu1 %v247_v63  ;;  %v243_v2 = vpop.f32.mrf.mxu1 }
 0x2c3   :  { %v2043_v3 = vpop.f32.mrf.mxu1 }
 0x34a   :  { %v249_v4 = vpop.xlane.xlu1 %248 }
 0x34b   :  { %v250_v5 = vsub.f32 %v241_v61, %v249_v4 }
 0x34d   :  { %v251_v6 = vmul.f32 1.442695, %v250_v5 }
 0x34f   :  { %2259 = vpow2.f32 %v251_v6 }
 0x35c   :  { %v2260_v7 = vpop.eup %2259 }
 0x35d   :  { %v253_v8 = vsel %vm246_vm5, %v2260_v7, 0.0 }
 0x35e   :  { %254 = vadd.xlane.f32.xlu1 %v253_v8 }
 0x36f   :  { %259 = vrot.lane.b32.xlu1 %v2487_v47, %s2366_s12 }
 0x373   :  { %309 = vrot.lane.b32.xlu1 %v2487_v47, %s2364_s30 }
 0x377   :  { %538 = vrot.lane.b32.xlu1 %v2493_v51, %s2363_s29 }
 0x3e7   :  { %v255_v10 = vpop.xlane.xlu1 %254 }
 0x3e8   :  { %2261 = vrcp.f32 %v255_v10 }
 0x3eb   :  { %v260_v11 = vpop.permute.xlu1 %259 }
 0x3ec   :  { %v266_v12 = vsel %vm264_vm6, %v260_v11, 0 }
 0x3ed   :  { %2045 = vmatpush3.bf16.msra.mxu1 %v266_v12 }
 0x3ee   :  { %2050 = vmatprep.subr.bf16.mxu1 %v2360_v9 }
 0x3ef   :  { %v310_v19 = vpop.permute.xlu1 %309 }
 0x3f3   :  { %v539_v21 = vpop.permute.xlu1 %538 }
 0x3f4   :  { %v544_v22 = vsel %vm199_vm2, %v539_v21, 0 }
 0x3f5   :  { %v2262_v13 = vpop.eup %2261 }
 0x3f6   :  { %v257_v14 = vmul.f32 %v2262_v13, %v2260_v7 }
 0x3f8   :  { %v258_v16 = vpack.c.bf16 %v257_v14, %v257_v14 }
 0x3fa   :  { %2047 = vmatmul.mubr.msk.bf16.vlgmr.msra.gmra.mxu1 %vm246_vm5, %v258_v16 }
 0x3fb   :  { %2051 = vmatpush3.bf16.xpose.msra.mxu1 %v317_v17  ;;  %2052 = vmatprep.mubr.msk.bf16.mxu1 %vm2361_vm1, %v2360_v9 }
 0x3fc   :  { %2062 = vmatprep.subr.bf16.mxu1 %v2360_v9 }
 0x402   :  { %2053 = vmatmul.mubr.msk.bf16.vlgmr.msra.gmra.mxu1 %vm199_vm2, %v310_v19 }
 0x403   :  { %2063 = vmatpush3.bf16.xpose.msra.mxu1 %v433_v20  ;;  %2064 = vmatprep.mubr.msk.bf16.mxu1 %vm2361_vm1, %v2360_v9 }
 0x404   :  { %2074 = vmatprep.subr.bf16.mxu1 %v2360_v9 }
 0x40a   :  { %2065 = vmatmul.mubr.msk.bf16.vlgmr.msra.gmra.mxu1 %vm199_vm2, %v2493_v51 }
 0x40b   :  { %2075 = vmatpush3.bf16.xpose.msra.mxu1 %v544_v22  ;;  %2076 = vmatprep.mubr.msk.bf16.mxu1 %vm2361_vm1, %v2360_v9 }
 0x40c   :  { %2086 = vmatprep.subr.bf16.mxu1 %v2360_v9 }
 0x412   :  { %2077 = vmatmul.mubr.msk.bf16.vlgmr.msra.gmra.mxu1 %vm199_vm2, %v537_v23 }
 0x413   :  { %2090 = vmatprep.mubr.msk.bf16.mxu1 %vm2361_vm1, %v2360_v9 }
 0x4ba   :  { %v302_v24 = vpop.f32.mrf.mxu1 }
 0x4bb   :  { %308 = vst.msk [vmem:[#allocation2] sm:$0xff] %vm199_vm2, %v302_v24 }
 0x4bc   :  { %v2048_v25 = vpop.f32.mrf.mxu1 }
 0x4be   :  { %v305_v29 = vpop.f32.mrf.mxu1 }
 0x4c0   :  { %v2049_v31 = vpop.f32.mrf.mxu1 }
 0x4c2   :  { %v353_v32 = vpop.f32.mrf.mxu1 }
 0x4c3   :  { %v354_v34 = vadd.f32 %v353_v32, %v2515_v59  ;;  %v2229_v32 = vld [vmem:[%s2912_s4 + $0x8] sm:$0xff]  }
 0x4c4   :  { %v2054_v35 = vpop.f32.mrf.mxu1  ;;  %2087 = vmatpush3.bf16.msra.mxu1 %v2229_v32 }
 0x4c5   :  { %v359_v37 = vsel %vm246_vm5, %v354_v34, -inf  ;;  %v2230_v35 = vld [vmem:[%s2912_s4] sm:$0xff]   ;;  %2088 = vmatprep.subr.bf16.mxu1 %v2360_v9 }
 0x4c6   :  { %360 = vmax.xlane.f32.xlu1 %v359_v37  ;;  %v356_v38 = vpop.f32.mrf.mxu1 }
 0x4c8   :  { %v2055_v40 = vpop.f32.mrf.mxu1  ;;  %2089 = vmatpush3.bf16.msra.mxu1 %v2230_v35 }
 0x4c9   :  { %2102 = vmatprep.subr.bf16.mxu1 %v2360_v9 }
 0x4ca   :  { %v469_v41 = vpop.f32.mrf.mxu1 }
 0x4cb   :  { %v470_v42 = vadd.f32 %v469_v41, %v2553_v39 }
 0x4cc   :  { %v2066_v43 = vpop.f32.mrf.mxu1 }
 0x4cd   :  { %v475_v44 = vsel %vm246_vm5, %v470_v42, -inf }
 0x4ce   :  { %476 = vmax.xlane.f32.xlu0 %v475_v44  ;;  %v472_v45 = vpop.f32.mrf.mxu1 }
 0x4d0   :  { %v2067_v46 = vpop.f32.mrf.mxu1 }
 0x4d2   :  { %v580_v48 = vpop.f32.mrf.mxu1 }
 0x4d3   :  { %v581_v49 = vadd.f32 %v580_v48, %v2553_v39 }
 0x4d4   :  { %v2078_v50 = vpop.f32.mrf.mxu1 }
 0x4d5   :  { %v586_v52 = vsel %vm246_vm5, %v581_v49, -inf }
 0x4d6   :  { %587 = vmax.xlane.f32.xlu0 %v586_v52  ;;  %v583_v53 = vpop.f32.mrf.mxu1  ;;  %v714_v52 = vsub.s32 4, %v2464_v26 }
 0x4d7   :  { %371 = vrot.lane.b32.xlu1 %v2487_v47, %s2367_s14 }
 0x4d8   :  { %v2079_v54 = vpop.f32.mrf.mxu1  ;;  %v715_v53 = vrot.slane %v2470_v28, %v714_v52 }
 0x54f   :  { %v361_v55 = vpop.xlane.xlu1 %360 }
 0x550   :  { %v362_v56 = vsub.f32 %v354_v34, %v361_v55 }
 0x552   :  { %v363_v57 = vmul.f32 1.442695, %v362_v56 }
 0x553   :  { %v372_v58 = vpop.permute.xlu1 %371 }
 0x554   :  { %2263 = vpow2.f32 %v363_v57  ;;  %v377_v60 = vsel %vm264_vm6, %v372_v58, 0 }
 0x555   :  { %2057 = vmatpush3.bf16.msra.mxu0 %v377_v60 }
 0x556   :  { %2068 = vmatprep.subr.bf16.mxu0 %v2360_v9 }
 0x557   :  { %v477_v61 = vpop.xlane.xlu0 %476 }
 0x558   :  { %v478_v62 = vsub.f32 %v470_v42, %v477_v61 }
 0x55a   :  { %v479_v63 = vmul.f32 1.442695, %v478_v62 }
 0x55c   :  { %2265 = vpow2.f32 %v479_v63 }
 0x55f   :  { %v588_v2 = vpop.xlane.xlu0 %587 }
 0x560   :  { %v589_v3 = vsub.f32 %v581_v49, %v588_v2 }
 0x561   :  { %v2264_v4 = vpop.eup %2263 }
 0x562   :  { %v590_v5 = vmul.f32 1.442695, %v589_v3  ;;  %v365_v47 = vsel %vm246_vm5, %v2264_v4, 0.0 }
 0x563   :  { %366 = vadd.xlane.f32.xlu0 %v365_v47  ;;  %v2232_v47 = vld [vmem:[%s2913_s5] sm:$0xff]  }
 0x564   :  { %2267 = vpow2.f32 %v590_v5  ;;  %v2231_v5 = vld [vmem:[%s2913_s5 + $0x8] sm:$0xff]  }
 0x569   :  { %v2266_v6 = vpop.eup %2265 }
 0x56a   :  { %v481_v7 = vsel %vm246_vm5, %v2266_v6, 0.0 }
 0x56b   :  { %482 = vadd.xlane.f32.xlu1 %v481_v7 }
 0x571   :  { %v2268_v8 = vpop.eup %2267 }
 0x572   :  { %v592_v10 = vsel %vm246_vm5, %v2268_v8, 0.0 }
 0x573   :  { %593 = vadd.xlane.f32.xlu0 %v592_v10 }
 0x57c   :  { %598 = vrot.lane.b32.xlu1 %v2493_v51, %s2367_s14 }
 0x589   :  { %487 = vrot.lane.b32.xlu0 %v2493_v51, %s2366_s12 }
 0x5ec   :  { %v367_v11 = vpop.xlane.xlu0 %366 }
 0x5ed   :  { %2269 = vrcp.f32 %v367_v11 }
 0x5f4   :  { %v483_v12 = vpop.xlane.xlu1 %482 }
 0x5f5   :  { %2271 = vrcp.f32 %v483_v12 }
 0x5f8   :  { %v599_v20 = vpop.permute.xlu1 %598 }
 0x5f9   :  { %v604_v22 = vsel %vm264_vm6, %v599_v20, 0  ;;  %v750_v20 = vsub.s32 2, %v2464_v26 }
 0x5fa   :  { %v2270_v13 = vpop.eup %2269 }
 0x5fb   :  { %v369_v14 = vmul.f32 %v2270_v13, %v2264_v4 }
 0x5fc   :  { %v594_v15 = vpop.xlane.xlu0 %593 }
 0x5fd   :  { %2273 = vrcp.f32 %v594_v15  ;;  %v370_v16 = vpack.c.bf16 %v369_v14, %v369_v14 }
 0x5ff   :  { %2059 = vmatmul.mubr.msk.bf16.vlgmr.msra.gmra.mxu0 %vm246_vm5, %v370_v16 }
 0x600   :  { %v488_v17 = vpop.permute.xlu0 %487  ;;  %2070 = vmatprep.mubr.msk.bf16.mxu0 %vm2361_vm1, %v2360_v9 }
 0x601   :  { %v493_v18 = vsel %vm264_vm6, %v488_v17, 0 }
 0x602   :  { %v2272_v19 = vpop.eup %2271  ;;  %2069 = vmatpush3.bf16.msra.mxu0 %v493_v18 }
 0x603   :  { %2080 = vmatprep.subr.bf16.mxu0 %v2360_v9  ;;  %v485_v51 = vmul.f32 %v2272_v19, %v2266_v6 }
 0x605   :  { %v486_v21 = vpack.c.bf16 %v485_v51, %v485_v51 }
 0x607   :  { %2071 = vmatmul.mubr.msk.bf16.vlgmr.msra.gmra.mxu0 %vm246_vm5, %v486_v21 }
 0x608   :  { %2081 = vmatpush3.bf16.msra.mxu0 %v604_v22  ;;  %2082 = vmatprep.mubr.msk.bf16.mxu0 %vm2361_vm1, %v2360_v9 }
 0x609   :  { %2094 = vmatprep.subr.bf16.mxu0 %v2360_v9 }
 0x60a   :  { %v2274_v23 = vpop.eup %2273 }
 0x60b   :  { %v596_v24 = vmul.f32 %v2274_v23, %v2268_v8 }
 0x60d   :  { %v597_v25 = vpack.c.bf16 %v596_v24, %v596_v24  ;;  %v751_v24 = vrot.slane %v2470_v28, %v750_v20 }
 0x60f   :  { %2083 = vmatmul.mubr.msk.bf16.vlgmr.msra.gmra.mxu0 %vm246_vm5, %v597_v25  ;;  %v756_v25 = vsub.s32 3, %v2464_v26 }
 0x610   :  { %2098 = vmatprep.mubr.msk.bf16.mxu0 %vm2361_vm1, %v2360_v9  ;;  %2095 = vmatpush3.bf16.msra.mxu0 %v2231_v5 }
 0x611   :  { %2096 = vmatprep.subr.bf16.mxu0 %v2360_v9 }
 0x614   :  { %2097 = vmatpush3.bf16.msra.mxu0 %v2232_v47 }
 0x615   :  { %2122 = vmatprep.subr.bf16.mxu0 %v2360_v9 }
 0x6bf   :  { %v413_v29 = vpop.f32.mrf.mxu0 }
 0x6c0   :  { %420 = vrot.lane.b32.xlu1 %v413_v29, %s2368_s15 }
 0x6c1   :  { %v2060_v30 = vpop.f32.mrf.mxu0 }
 0x6c3   :  { %v416_v31 = vpop.f32.mrf.mxu0 }
 0x6c5   :  { %v2061_v34 = vpop.f32.mrf.mxu0 }
 0x6c6   :  { %v757_v34 = vrot.slane %v2470_v28, %v756_v25 }
 0x6c7   :  { %v529_v36 = vpop.f32.mrf.mxu0 }
 0x6c8   :  { %535 = vst.msk [vmem:[#allocation2 + $0x8] sm:$0xff] %vm199_vm2, %v529_v36 }
 0x6c9   :  { %v2072_v37 = vpop.f32.mrf.mxu0 }
 0x6cb   :  { %v532_v38 = vpop.f32.mrf.mxu0 }
 0x6cd   :  { %v2073_v40 = vpop.f32.mrf.mxu0 }
 0x6ce   :  { %v2233_v40 = vld [vmem:[%s2915_s7 + $0x38] sm:$0xff]  }
 0x6cf   :  { %v640_v41 = vpop.f32.mrf.mxu0 }
 0x6d0   :  { %647 = vrot.lane.b32.xlu1 %v640_v41, %s2368_s15  ;;  %v2234_v41 = vld [vmem:[%s2915_s7 + $0x30] sm:$0xff]  }
 0x6d1   :  { %v2084_v42 = vpop.f32.mrf.mxu0 }
 0x6d2   :  { %v2235_v42 = vld [vmem:[%s2915_s7 + $0x28] sm:$0xff]  }
 0x6d3   :  { %v643_v43 = vpop.f32.mrf.mxu0 }
 0x6d4   :  { %v2236_v43 = vld [vmem:[%s2915_s7 + $0x20] sm:$0xff]  }
 0x6d5   :  { %v2085_v44 = vpop.f32.mrf.mxu0 }
 0x6d6   :  { %v2237_v44 = vld [vmem:[%s2915_s7 + $0x18] sm:$0xff]  }
 0x732   :  { %v421_v45 = vpop.permute.xlu1 %420 }
 0x733   :  { %424 = vst.msk [vmem:[#allocation2] sm:$0xff] %vm423_vm8, %v421_v45  ;;  %v2238_v45 = vld [vmem:[%s2915_s7 + $0x10] sm:$0xff]  }
 0x73a   :  { %v651_v48 = vld [vmem:[#allocation2] sm:$0xff] }
 0x742   :  { %v648_v46 = vpop.permute.xlu1 %647 }
 0x743   :  { %650 = vst.msk [vmem:[#allocation2 + $0x8] sm:$0xff] %vm423_vm8, %v648_v46  ;;  %v2239_v46 = vld [vmem:[%s2915_s7 + $0x8] sm:$0xff]  }
 0x74a   :  { %v652_v49 = vld [vmem:[#allocation2 + $0x8] sm:$0xff] }
 0x74b   :  { %v653_v50 = vpack.c.bf16 %v652_v49, %v651_v48  ;;  %v2240_v48 = vld [vmem:[%s2915_s7] sm:$0xff]  }
 0x74c   :  { %v1888_v49 = vld [vmem:[%s2914_s6] ss:$0 sm:$0xff] }
 0x74d   :  { %2091 = vmatmul.mubr.msk.bf16.vlgmr.msra.gmra.mxu1 %vm90_vm0, %v653_v50 }
 0x74e   :  { %2118 = vmatprep.mubr.msk.bf16.mxu1 %vm2361_vm1, %v2360_v9  ;;  %2103 = vmatpush3.bf16.msra.mxu1 %v2233_v40 }
 0x74f   :  { %2104 = vmatprep.subr.bf16.mxu1 %v2360_v9 }
 0x752   :  { %2105 = vmatpush3.bf16.msra.mxu1 %v2234_v41 }
 0x753   :  { %2106 = vmatprep.subr.bf16.mxu1 %v2360_v9 }
 0x756   :  { %2107 = vmatpush3.bf16.msra.mxu1 %v2235_v42 }
 0x757   :  { %2108 = vmatprep.subr.bf16.mxu1 %v2360_v9 }
 0x75a   :  { %2109 = vmatpush3.bf16.msra.mxu1 %v2236_v43 }
 0x75b   :  { %2110 = vmatprep.subr.bf16.mxu1 %v2360_v9 }
 0x75e   :  { %2111 = vmatpush3.bf16.msra.mxu1 %v2237_v44 }
 0x75f   :  { %2112 = vmatprep.subr.bf16.mxu1 %v2360_v9 }
 0x762   :  { %2113 = vmatpush3.bf16.msra.mxu1 %v2238_v45  ;;  %v2708_v45 = vld [vmem:[%s2916_s8 + $0x8] sm:$0x3f] }
 0x763   :  { %2114 = vmatprep.subr.bf16.mxu1 %v2360_v9 }
 0x766   :  { %2115 = vmatpush3.bf16.msra.mxu1 %v2239_v46  ;;  %v1004_v46 = vrot.slane %v2708_v45, %v124_v27  ;;  %v1931_v27 = vld [vmem:[%s2911_s3 + $0x1] ss:$0 sm:$0xff] }
 0x767   :  { %2116 = vmatprep.subr.bf16.mxu1 %v2360_v9 }
 0x76a   :  { %2117 = vmatpush3.bf16.msra.mxu1 %v2240_v48 }
 0x76b   :  { %2148 = vmatprep.subr.bf16.mxu1 %v2360_v9 }
 0x80d   :  { %v703_v54 = vpop.f32.mrf.mxu1 }
 0x80e   :  { %v710_v55 = vadd.f32 %v703_v54, %v2433_v0 }
 0x80f   :  { %v2092_v56 = vpop.f32.mrf.mxu1 }
 0x810   :  { %v2604_v57 = vadd.f32 %v715_v53, %v710_v55 }
 0x811   :  { %v706_v58 = vpop.f32.mrf.mxu1 }
 0x812   :  { %v711_v60 = vadd.f32 %v706_v58, %v2438_v1  ;;  %v718_v61 = vsel %vm90_vm0, %v2604_v57, 0.0  ;;  %v726_v62 = vmul.f32 %v2604_v57, %v2604_v57 }
 0x813   :  { %719 = vadd.xlane.f32.xlu0 %v718_v61  ;;  %v2093_v63 = vpop.f32.mrf.mxu1 }
 0x814   :  { %v2611_v2 = vadd.f32 %v715_v53, %v711_v60  ;;  %v728_v3 = vsel %vm90_vm0, %v726_v62, 0.0 }
 0x816   :  { %v721_v0 = vsel %vm90_vm0, %v2611_v2, 0.0  ;;  %v727_v4 = vmul.f32 %v2611_v2, %v2611_v2 }
 0x817   :  { %729 = vadd.xlane.f32.xlu0 %v728_v3  ;;  %722 = vadd.xlane.f32.xlu1 %v721_v0 }
 0x818   :  { %v731_v1 = vsel %vm90_vm0, %v727_v4, 0.0 }
 0x81b   :  { %732 = vadd.xlane.f32.xlu0 %v731_v1 }
 0x89c   :  { %v720_v6 = vpop.xlane.xlu0 %719 }
 0x89d   :  { %v724_v7 = vmul.f32 0.03125, %v720_v6 }
 0x89f   :  { %v736_v11 = vmul.f32 %v724_v7, %v724_v7  ;;  %v740_v21 = vsub.f32 %v2604_v57, %v724_v7 }
 0x8a0   :  { %v730_v8 = vpop.xlane.xlu0 %729  ;;  %v723_v10 = vpop.xlane.xlu1 %722 }
 0x8a1   :  { %v734_v12 = vmul.f32 0.03125, %v730_v8  ;;  %v725_v13 = vmul.f32 0.03125, %v723_v10  ;;  %v931_v10 = vsub.s32 5, %v2464_v26 }
 0x8a3   :  { %v738_v14 = vsub.f32 %v734_v12, %v736_v11  ;;  %v737_v17 = vmul.f32 %v725_v13, %v725_v13  ;;  %v741_v29 = vsub.f32 %v2611_v2, %v725_v13  ;;  %v932_v11 = vrot.slane %v2470_v28, %v931_v10 }
 0x8a4   :  { %v733_v15 = vpop.xlane.xlu0 %732 }
 0x8a5   :  { %v742_v16 = vadd.f32 1e-05, %v738_v14  ;;  %v735_v18 = vmul.f32 0.03125, %v733_v15 }
 0x8a7   :  { %2275 = vrsqrt.f32 %v742_v16  ;;  %v739_v19 = vsub.f32 %v735_v18, %v737_v17 }
 0x8a9   :  { %v743_v51 = vadd.f32 1e-05, %v739_v19 }
 0x8ab   :  { %2277 = vrsqrt.f32 %v743_v51 }
 0x8b4   :  { %v2276_v22 = vpop.eup %2275 }
 0x8b5   :  { %v746_v23 = vmul.f32 %v2276_v22, %v740_v21 }
 0x8b7   :  { %v752_v32 = vmul.f32 %v751_v24, %v746_v23  ;;  %v2241_v23 = vld [vmem:[%s2910_s2 + $0x18] sm:$0xff]  }
 0x8b8   :  { %v2278_v30 = vpop.eup %2277 }
 0x8b9   :  { %v747_v31 = vmul.f32 %v2278_v30, %v741_v29  ;;  %v758_v36 = vadd.f32 %v757_v34, %v752_v32 }
 0x8bb   :  { %v753_v35 = vmul.f32 %v751_v24, %v747_v31  ;;  %v2242_v24 = vld [vmem:[%s2910_s2 + $0x10] sm:$0xff]  }
 0x8bd   :  { %v759_v37 = vadd.f32 %v757_v34, %v753_v35 }
 0x8bf   :  { %v760_v38 = vpack.c.bf16 %v759_v37, %v758_v36 }
 0x8c1   :  { %2099 = vmatmul.mubr.msk.bf16.vlgmr.msra.gmra.mxu0 %vm90_vm0, %v760_v38 }
 0x8c2   :  { %2126 = vmatprep.mubr.msk.bf16.mxu0 %vm2361_vm1, %v2360_v9  ;;  %2123 = vmatpush3.bf16.msra.mxu0 %v2241_v23 }
 0x8c3   :  { %2124 = vmatprep.subr.bf16.mxu0 %v2360_v9 }
 0x8c6   :  { %2125 = vmatpush3.bf16.msra.mxu0 %v2242_v24 }
 0x8c7   :  { %2130 = vmatprep.subr.bf16.mxu0 %v2360_v9 }
 0x981   :  { %v814_v50 = vpop.f32.mrf.mxu0 }
 0x982   :  { %v815_v53 = vadd.f32 %v1888_v49, %v814_v50  ;;  %v1010_v50 = vrot.slane %v2708_v45, %v130_v33 }
 0x983   :  { %v2100_v54 = vpop.f32.mrf.mxu0 }
 0x984   :  { %v1892_v55 = vmul.f32 -1.702, %v815_v53 }
 0x985   :  { %v817_v56 = vpop.f32.mrf.mxu0 }
 0x986   :  { %v825_v58 = vmul.f32 1.442695, %v1892_v55  ;;  %v818_v60 = vadd.f32 %v1888_v49, %v817_v56 }
 0x987   :  { %v2101_v61 = vpop.f32.mrf.mxu0 }
 0x988   :  { %2279 = vpow2.f32 %v825_v58  ;;  %v1893_v62 = vmul.f32 -1.702, %v818_v60 }
 0x98a   :  { %v827_v63 = vmul.f32 1.442695, %v1893_v62 }
 0x98c   :  { %2281 = vpow2.f32 %v827_v63 }
 0x995   :  { %v2280_v3 = vpop.eup %2279 }
 0x996   :  { %v829_v0 = vadd.f32 1.0, %v2280_v3 }
 0x998   :  { %2283 = vrcp.f32 %v829_v0 }
 0x999   :  { %v2282_v4 = vpop.eup %2281 }
 0x99a   :  { %v830_v1 = vadd.f32 1.0, %v2282_v4 }
 0x99c   :  { %2285 = vrcp.f32 %v830_v1 }
 0x9a5   :  { %v2284_v5 = vpop.eup %2283 }
 0x9a6   :  { %v835_v6 = vmul.f32 %v2284_v5, %v815_v53 }
 0x9a9   :  { %v2286_v47 = vpop.eup %2285 }
 0x9aa   :  { %v836_v7 = vmul.f32 %v2286_v47, %v818_v60 }
 0x9ac   :  { %v837_v8 = vpack.c.bf16 %v836_v7, %v835_v6 }
 0x9ae   :  { %2119 = vmatmul.mubr.bf16.vlgmr.msra.gmra.mxu1 %v837_v8 }
 0x9af   :  { %2150 = vmatprep.mubr.msk.bf16.mxu1 %vm2361_vm1, %v2360_v9 }
 0xa6e   :  { %v920_v12 = vpop.f32.mrf.mxu1 }
 0xa6f   :  { %v927_v13 = vadd.f32 %v920_v12, %v2604_v57 }
 0xa70   :  { %v2120_v14 = vpop.f32.mrf.mxu1 }
 0xa71   :  { %v2682_v15 = vadd.f32 %v932_v11, %v927_v13 }
 0xa72   :  { %v923_v16 = vpop.f32.mrf.mxu1 }
 0xa73   :  { %v928_v17 = vadd.f32 %v923_v16, %v2611_v2  ;;  %v971_v18 = vsel %vm90_vm0, %v2682_v15, 0.0  ;;  %v979_v19 = vmul.f32 %v2682_v15, %v2682_v15 }
 0xa74   :  { %972 = vadd.xlane.f32.xlu0 %v971_v18  ;;  %v2121_v51 = vpop.f32.mrf.mxu1 }
 0xa75   :  { %v2689_v21 = vadd.f32 %v932_v11, %v928_v17  ;;  %v981_v28 = vsel %vm90_vm0, %v979_v19, 0.0 }
 0xa77   :  { %v974_v57 = vsel %vm90_vm0, %v2689_v21, 0.0  ;;  %v980_v22 = vmul.f32 %v2689_v21, %v2689_v21 }
 0xa78   :  { %982 = vadd.xlane.f32.xlu0 %v981_v28  ;;  %975 = vadd.xlane.f32.xlu1 %v974_v57 }
 0xa79   :  { %v984_v2 = vsel %vm90_vm0, %v980_v22, 0.0 }
 0xa7c   :  { %985 = vadd.xlane.f32.xlu1 %v984_v2 }
 0xafd   :  { %v973_v29 = vpop.xlane.xlu0 %972 }
 0xafe   :  { %v977_v30 = vmul.f32 0.03125, %v973_v29 }
 0xb00   :  { %v989_v34 = vmul.f32 %v977_v30, %v977_v30  ;;  %v993_v48 = vsub.f32 %v2682_v15, %v977_v30 }
 0xb01   :  { %v983_v31 = vpop.xlane.xlu0 %982  ;;  %v976_v32 = vpop.xlane.xlu1 %975 }
 0xb02   :  { %v987_v35 = vmul.f32 0.03125, %v983_v31  ;;  %v978_v36 = vmul.f32 0.03125, %v976_v32 }
 0xb04   :  { %v991_v37 = vsub.f32 %v987_v35, %v989_v34  ;;  %v990_v41 = vmul.f32 %v978_v36, %v978_v36  ;;  %v994_v54 = vsub.f32 %v2689_v21, %v978_v36 }
 0xb05   :  { %v986_v38 = vpop.xlane.xlu1 %985 }
 0xb06   :  { %v995_v40 = vadd.f32 1e-05, %v991_v37  ;;  %v988_v42 = vmul.f32 0.03125, %v986_v38 }
 0xb08   :  { %2287 = vrsqrt.f32 %v995_v40  ;;  %v992_v43 = vsub.f32 %v988_v42, %v990_v41 }
 0xb0a   :  { %v996_v44 = vadd.f32 1e-05, %v992_v43 }
 0xb0c   :  { %2289 = vrsqrt.f32 %v996_v44 }
 0xb15   :  { %v2288_v49 = vpop.eup %2287 }
 0xb16   :  { %v999_v53 = vmul.f32 %v2288_v49, %v993_v48 }
 0xb18   :  { %v1005_v55 = vmul.f32 %v1004_v46, %v999_v53 }
 0xb19   :  { %v2290_v56 = vpop.eup %2289 }
 0xb1a   :  { %v1000_v58 = vmul.f32 %v2290_v56, %v994_v54  ;;  %v1011_v60 = vadd.f32 %v1010_v50, %v1005_v55 }
 0xb1c   :  { %v1006_v61 = vmul.f32 %v1004_v46, %v1000_v58 }
 0xb1e   :  { %v1012_v62 = vadd.f32 %v1010_v50, %v1006_v61 }
 0xb20   :  { %v1013_v63 = vpack.c.bf16 %v1012_v62, %v1011_v60 }
 0xb22   :  { %2127 = vmatmul.mubr.msk.bf16.vlgmr.msra.gmra.mxu0 %vm90_vm0, %v1013_v63 }
 0xb23   :  { %2132 = vmatprep.mubr.msk.bf16.mxu0 %vm2361_vm1, %v2360_v9 }
 0xbe2   :  { %v1067_v33 = vpop.f32.mrf.mxu0 }
 0xbe3   :  { %v1068_v3 = vadd.f32 %v1931_v27, %v1067_v33 }
 0xbe4   :  { %v2128_v0 = vpop.f32.mrf.mxu0 }
 0xbe5   :  { %v2724_v4 = vpack.c.bf16 %v1068_v3, %v1068_v3 }
 0xbe6   :  { %v1070_v1 = vpop.f32.mrf.mxu0 }
 0xbe7   :  { %1076 = vrot.lane.b32.xlu0 %v2724_v4, %s2362_s28  ;;  %v1071_v47 = vadd.f32 %v1931_v27, %v1070_v1 }
 0xbe8   :  { %v2129_v5 = vpop.f32.mrf.mxu0 }
 0xbe9   :  { %v2730_v6 = vpack.c.bf16 %v1071_v47, %v1071_v47 }
 0xbeb   :  { %1187 = vrot.lane.b32.xlu0 %v2724_v4, %s2363_s29 }
 0xbef   :  { %1302 = vrot.lane.b32.xlu0 %v2730_v6, %s2362_s28  ;;  %s2369_s28 = smov [#allocation5]  }
 0xbf3   :  { %1411 = vrot.lane.b32.xlu0 %v2730_v6, %s2364_s30 }
 0xc59   :  { %v1077_v7 = vpop.permute.xlu0 %1076 }
 0xc5a   :  { %v1082_v8 = vsel %vm199_vm2, %v1077_v7, 0 }
 0xc5b   :  { %2131 = vmatpush3.bf16.xpose.msra.mxu0 %v1082_v8 }
 0xc5c   :  { %2136 = vmatprep.subr.bf16.mxu0 %v2360_v9 }
 0xc5d   :  { %v1188_v30 = vpop.permute.xlu0 %1187 }
 0xc5e   :  { %v1193_v32 = vsel %vm199_vm2, %v1188_v30, 0 }
 0xc61   :  { %v1303_v34 = vpop.permute.xlu0 %1302 }
 0xc62   :  { %2133 = vmatmul.mubr.msk.bf16.vlgmr.msra.gmra.mxu0 %vm199_vm2, %v2724_v4  ;;  %v1308_v36 = vsel %vm199_vm2, %v1303_v34, 0 }
 0xc63   :  { %2138 = vmatprep.mubr.msk.bf16.mxu0 %vm2361_vm1, %v2360_v9 }
 0xc65   :  { %v1412_v40 = vpop.permute.xlu0 %1411 }
 0xd22   :  { %v1118_v11 = vpop.f32.mrf.mxu0 }
 0xd23   :  { %v1119_v12 = vadd.f32 %v1118_v11, %v2515_v59 }
 0xd24   :  { %v2134_v13 = vpop.f32.mrf.mxu0 }
 0xd25   :  { %v1124_v14 = vsel %vm246_vm5, %v1119_v12, -inf }
 0xd26   :  { %1125 = vmax.xlane.f32.xlu1 %v1124_v14  ;;  %v1121_v16 = vpop.f32.mrf.mxu0 }
 0xd28   :  { %v2135_v17 = vpop.f32.mrf.mxu0 }
 0xdaf   :  { %v1126_v18 = vpop.xlane.xlu1 %1125 }
 0xdb0   :  { %v1127_v19 = vsub.f32 %v1119_v12, %v1126_v18 }
 0xdb2   :  { %v1128_v51 = vmul.f32 1.442695, %v1127_v19 }
 0xdb4   :  { %2291 = vpow2.f32 %v1128_v51 }
 0xdc1   :  { %v2292_v28 = vpop.eup %2291 }
 0xdc2   :  { %v1130_v57 = vsel %vm246_vm5, %v2292_v28, 0.0 }
 0xdc3   :  { %1131 = vadd.xlane.f32.xlu1 %v1130_v57 }
 0xdd4   :  { %1136 = vrot.lane.b32.xlu1 %v2724_v4, %s2366_s12 }
 0xdd8   :  { %1185 = vrot.lane.b32.xlu1 %v2724_v4, %s2364_s30 }
 0xddc   :  { %1413 = vrot.lane.b32.xlu1 %v2730_v6, %s2363_s29  ;;  %s1861_s29 = sshll.u32 %s2369_s28, 4  ;;  %s1862_s29 = int_to_ptr.vmem [resolvable:$true] %s1861_s29 }
 0xddd   :  { %s2335_s30 = scalar_lea.vmem %s1862_s29, 256  ;;  %p2340_p6 = scmp.lt.s32.totalorder %s1862_s29, %s1862_s29 }
 0xdde   :  { %p2336_p5 = scmp.ne.s32.totalorder %s1862_s29, %s2335_s30  ;;  %p2341_p7 = scmp.lt.s32.totalorder %s2335_s30, %s2335_s30 }
 0xde0   :  { %p2342_p8 = por %p2341_p7, %p2340_p6 }
 0xde2   :  { %p2343_p9 = pnand %p2342_p8, %p2336_p5 }
 0xe4c   :  { %v1132_v22 = vpop.xlane.xlu1 %1131 }
 0xe4d   :  { %2293 = vrcp.f32 %v1132_v22 }
 0xe50   :  { %v1137_v2 = vpop.permute.xlu1 %1136 }
 0xe51   :  { %v1142_v23 = vsel %vm264_vm6, %v1137_v2, 0 }
 0xe52   :  { %2137 = vmatpush3.bf16.msra.mxu0 %v1142_v23 }
 0xe53   :  { %2142 = vmatprep.subr.bf16.mxu0 %v2360_v9 }
 0xe54   :  { %v1186_v35 = vpop.permute.xlu1 %1185 }
 0xe58   :  { %v1414_v37 = vpop.permute.xlu1 %1413 }
 0xe59   :  { %v1419_v38 = vsel %vm199_vm2, %v1414_v37, 0 }
 0xe5a   :  { %v2294_v24 = vpop.eup %2293 }
 0xe5b   :  { %v1134_v29 = vmul.f32 %v2294_v24, %v2292_v28 }
 0xe5d   :  { %v1135_v31 = vpack.c.bf16 %v1134_v29, %v1134_v29 }
 0xe5f   :  { %2139 = vmatmul.mubr.msk.bf16.vlgmr.msra.gmra.mxu0 %vm246_vm5, %v1135_v31 }
 0xe60   :  { %2143 = vmatpush3.bf16.xpose.msra.mxu0 %v1193_v32  ;;  %2144 = vmatprep.mubr.msk.bf16.mxu0 %vm2361_vm1, %v2360_v9 }
 0xe61   :  { %2154 = vmatprep.subr.bf16.mxu0 %v2360_v9 }
 0xe67   :  { %2145 = vmatmul.mubr.msk.bf16.vlgmr.msra.gmra.mxu0 %vm199_vm2, %v1186_v35 }
 0xe68   :  { %2155 = vmatpush3.bf16.xpose.msra.mxu0 %v1308_v36  ;;  %2156 = vmatprep.mubr.msk.bf16.mxu0 %vm2361_vm1, %v2360_v9 }
 0xe69   :  { %2166 = vmatprep.subr.bf16.mxu0 %v2360_v9 }
 0xe6f   :  { %2157 = vmatmul.mubr.msk.bf16.vlgmr.msra.gmra.mxu0 %vm199_vm2, %v2730_v6 }
 0xe70   :  { %2167 = vmatpush3.bf16.xpose.msra.mxu0 %v1419_v38  ;;  %2168 = vmatprep.mubr.msk.bf16.mxu0 %vm2361_vm1, %v2360_v9 }
 0xe71   :  { %2178 = vmatprep.subr.bf16.mxu0 %v2360_v9 }
 0xe77   :  { %2169 = vmatmul.mubr.msk.bf16.vlgmr.msra.gmra.mxu0 %vm199_vm2, %v1412_v40 }
 0xe78   :  { %2182 = vmatprep.mubr.msk.bf16.mxu0 %vm2361_vm1, %v2360_v9 }
 0xf1f   :  { %v1178_v41 = vpop.f32.mrf.mxu0 }
 0xf20   :  { %1184 = vst.msk [vmem:[#allocation2] sm:$0xff] %vm199_vm2, %v1178_v41 }
 0xf21   :  { %v2140_v42 = vpop.f32.mrf.mxu0 }
 0xf23   :  { %v1181_v43 = vpop.f32.mrf.mxu0 }
 0xf25   :  { %v2141_v44 = vpop.f32.mrf.mxu0 }
 0xf26   :  { %v2243_v44 = vld [vmem:[%s2912_s4 + $0x18] sm:$0xff]  }
 0xf27   :  { %v1229_v46 = vpop.f32.mrf.mxu0  ;;  %2179 = vmatpush3.bf16.msra.mxu0 %v2243_v44 }
 0xf28   :  { %v1230_v48 = vadd.f32 %v1229_v46, %v2515_v59  ;;  %2180 = vmatprep.subr.bf16.mxu0 %v2360_v9 }
 0xf29   :  { %v2146_v49 = vpop.f32.mrf.mxu0 }
 0xf2a   :  { %v1235_v50 = vsel %vm246_vm5, %v1230_v48, -inf }
 0xf2b   :  { %1236 = vmax.xlane.f32.xlu1 %v1235_v50  ;;  %v1232_v53 = vpop.f32.mrf.mxu0 }
 0xf2d   :  { %v2147_v54 = vpop.f32.mrf.mxu0 }
 0xf2f   :  { %v1344_v55 = vpop.f32.mrf.mxu0 }
 0xf30   :  { %v1345_v56 = vadd.f32 %v1344_v55, %v2553_v39 }
 0xf31   :  { %v2158_v58 = vpop.f32.mrf.mxu0 }
 0xf32   :  { %v1350_v60 = vsel %vm246_vm5, %v1345_v56, -inf }
 0xf33   :  { %1351 = vmax.xlane.f32.xlu0 %v1350_v60  ;;  %v1347_v61 = vpop.f32.mrf.mxu0 }
 0xf35   :  { %v2159_v62 = vpop.f32.mrf.mxu0 }
 0xf37   :  { %v1455_v63 = vpop.f32.mrf.mxu0 }
 0xf38   :  { %v1456_v27 = vadd.f32 %v1455_v63, %v2553_v39 }
 0xf39   :  { %v2170_v33 = vpop.f32.mrf.mxu0 }
 0xf3a   :  { %v1461_v59 = vsel %vm246_vm5, %v1456_v27, -inf }
 0xf3b   :  { %1462 = vmax.xlane.f32.xlu0 %v1461_v59  ;;  %v1458_v3 = vpop.f32.mrf.mxu0  ;;  %v1590_v59 = vrot.slane %v2708_v45, %v714_v52 }
 0xf3c   :  { %1247 = vrot.lane.b32.xlu1 %v2724_v4, %s2367_s14 }
 0xf3d   :  { %v2171_v0 = vpop.f32.mrf.mxu0 }
 0xfb4   :  { %v1237_v1 = vpop.xlane.xlu1 %1236 }
 0xfb5   :  { %v1238_v5 = vsub.f32 %v1230_v48, %v1237_v1  ;;  %v2244_v48 = vld [vmem:[%s2912_s4 + $0x10] sm:$0xff]  }
 0xfb6   :  { %2181 = vmatpush3.bf16.msra.mxu0 %v2244_v48  ;;  %v2247_v48 = vld [vmem:[%s2915_s7 + $0x78] sm:$0xff]  }
 0xfb7   :  { %v1239_v47 = vmul.f32 1.442695, %v1238_v5  ;;  %2194 = vmatprep.subr.bf16.mxu0 %v2360_v9 }
 0xfb8   :  { %v1248_v7 = vpop.permute.xlu1 %1247 }
 0xfb9   :  { %2295 = vpow2.f32 %v1239_v47  ;;  %v1253_v8 = vsel %vm264_vm6, %v1248_v7, 0 }
 0xfba   :  { %2149 = vmatpush3.bf16.msra.mxu1 %v1253_v8 }
 0xfbb   :  { %2160 = vmatprep.subr.bf16.mxu1 %v2360_v9 }
 0xfbc   :  { %v1352_v39 = vpop.xlane.xlu0 %1351 }
 0xfbd   :  { %v1353_v11 = vsub.f32 %v1345_v56, %v1352_v39 }
 0xfbf   :  { %v1354_v12 = vmul.f32 1.442695, %v1353_v11 }
 0xfc1   :  { %2297 = vpow2.f32 %v1354_v12 }
 0xfc4   :  { %v1463_v13 = vpop.xlane.xlu0 %1462 }
 0xfc5   :  { %v1464_v14 = vsub.f32 %v1456_v27, %v1463_v13 }
 0xfc6   :  { %v2296_v16 = vpop.eup %2295 }
 0xfc7   :  { %v1465_v17 = vmul.f32 1.442695, %v1464_v14  ;;  %v1241_v4 = vsel %vm246_vm5, %v2296_v16, 0.0  ;;  %v2245_v14 = vld [vmem:[%s2913_s5 + $0x18] sm:$0xff]  }
 0xfc8   :  { %1242 = vadd.xlane.f32.xlu0 %v1241_v4 }
 0xfc9   :  { %2299 = vpow2.f32 %v1465_v17 }
 0xfce   :  { %v2298_v18 = vpop.eup %2297 }
 0xfcf   :  { %v1356_v19 = vsel %vm246_vm5, %v2298_v18, 0.0 }
 0xfd0   :  { %1357 = vadd.xlane.f32.xlu1 %v1356_v19 }
 0xfd6   :  { %v2300_v51 = vpop.eup %2299 }
 0xfd7   :  { %v1467_v28 = vsel %vm246_vm5, %v2300_v51, 0.0 }
 0xfd8   :  { %1468 = vadd.xlane.f32.xlu0 %v1467_v28 }
 0xfe1   :  { %1473 = vrot.lane.b32.xlu1 %v2730_v6, %s2367_s14 }
 0xfee   :  { %1362 = vrot.lane.b32.xlu0 %v2730_v6, %s2366_s12 }
0x1051   :  { %v1243_v57 = vpop.xlane.xlu0 %1242 }
0x1052   :  { %2301 = vrcp.f32 %v1243_v57 }
0x1059   :  { %v1358_v22 = vpop.xlane.xlu1 %1357 }
0x105a   :  { %2303 = vrcp.f32 %v1358_v22 }
0x105d   :  { %v1474_v34 = vpop.permute.xlu1 %1473 }
0x105e   :  { %v1479_v36 = vsel %vm264_vm6, %v1474_v34, 0 }
0x105f   :  { %v2302_v2 = vpop.eup %2301 }
0x1060   :  { %v1245_v23 = vmul.f32 %v2302_v2, %v2296_v16  ;;  %v2246_v16 = vld [vmem:[%s2913_s5 + $0x10] sm:$0xff]  }
0x1061   :  { %v1469_v24 = vpop.xlane.xlu0 %1468 }
0x1062   :  { %2305 = vrcp.f32 %v1469_v24  ;;  %v1246_v29 = vpack.c.bf16 %v1245_v23, %v1245_v23 }
0x1064   :  { %2151 = vmatmul.mubr.msk.bf16.vlgmr.msra.gmra.mxu1 %vm246_vm5, %v1246_v29 }
0x1065   :  { %v1363_v30 = vpop.permute.xlu0 %1362  ;;  %2162 = vmatprep.mubr.msk.bf16.mxu1 %vm2361_vm1, %v2360_v9 }
0x1066   :  { %v1368_v31 = vsel %vm264_vm6, %v1363_v30, 0 }
0x1067   :  { %v2304_v32 = vpop.eup %2303  ;;  %2161 = vmatpush3.bf16.msra.mxu1 %v1368_v31 }
0x1068   :  { %2172 = vmatprep.subr.bf16.mxu1 %v2360_v9  ;;  %v1360_v6 = vmul.f32 %v2304_v32, %v2298_v18 }
0x106a   :  { %v1361_v35 = vpack.c.bf16 %v1360_v6, %v1360_v6 }
0x106c   :  { %2163 = vmatmul.mubr.msk.bf16.vlgmr.msra.gmra.mxu1 %vm246_vm5, %v1361_v35  ;;  %v1626_v35 = vrot.slane %v2708_v45, %v750_v20  ;;  %v2248_v20 = vld [vmem:[%s2915_s7 + $0x70] sm:$0xff]  }
0x106d   :  { %2173 = vmatpush3.bf16.msra.mxu1 %v1479_v36  ;;  %2174 = vmatprep.mubr.msk.bf16.mxu1 %vm2361_vm1, %v2360_v9 }
0x106e   :  { %2186 = vmatprep.subr.bf16.mxu1 %v2360_v9 }
0x106f   :  { %v2306_v37 = vpop.eup %2305 }
0x1070   :  { %v1471_v38 = vmul.f32 %v2306_v37, %v2300_v51 }
0x1072   :  { %v1472_v40 = vpack.c.bf16 %v1471_v38, %v1471_v38 }
0x1074   :  { %2175 = vmatmul.mubr.msk.bf16.vlgmr.msra.gmra.mxu1 %vm246_vm5, %v1472_v40 }
0x1075   :  { %2190 = vmatprep.mubr.msk.bf16.mxu1 %vm2361_vm1, %v2360_v9  ;;  %2187 = vmatpush3.bf16.msra.mxu1 %v2245_v14 }
0x1076   :  { %2188 = vmatprep.subr.bf16.mxu1 %v2360_v9 }
0x1079   :  { %2189 = vmatpush3.bf16.msra.mxu1 %v2246_v16 }
0x1124   :  { %v1289_v41 = vpop.f32.mrf.mxu1 }
0x1125   :  { %1296 = vrot.lane.b32.xlu1 %v1289_v41, %s2368_s15  ;;  %v1632_v41 = vrot.slane %v2708_v45, %v756_v25  ;;  %v2249_v25 = vld [vmem:[%s2915_s7 + $0x68] sm:$0xff]  }
0x1126   :  { %v2152_v42 = vpop.f32.mrf.mxu1 }
0x1128   :  { %v1292_v43 = vpop.f32.mrf.mxu1 }
0x112a   :  { %v2153_v46 = vpop.f32.mrf.mxu1 }
0x112c   :  { %v1404_v49 = vpop.f32.mrf.mxu1 }
0x112d   :  { %1410 = vst.msk [vmem:[#allocation2 + $0x8] sm:$0xff] %vm199_vm2, %v1404_v49  ;;  %v2250_v49 = vld [vmem:[%s2915_s7 + $0x60] sm:$0xff]  }
0x112e   :  { %v2164_v50 = vpop.f32.mrf.mxu1 }
0x112f   :  { %v2251_v50 = vld [vmem:[%s2915_s7 + $0x58] sm:$0xff]  }
0x1130   :  { %v1407_v53 = vpop.f32.mrf.mxu1 }
0x1131   :  { %v2252_v53 = vld [vmem:[%s2915_s7 + $0x50] sm:$0xff]  }
0x1132   :  { %v2165_v54 = vpop.f32.mrf.mxu1 }
0x1133   :  { %v2253_v54 = vld [vmem:[%s2915_s7 + $0x48] sm:$0xff]  }
0x1134   :  { %v1515_v55 = vpop.f32.mrf.mxu1 }
0x1135   :  { %1522 = vrot.lane.b32.xlu1 %v1515_v55, %s2368_s15  ;;  %v2254_v55 = vld [vmem:[%s2915_s7 + $0x40] sm:$0xff]  }
0x1136   :  { %v2176_v56 = vpop.f32.mrf.mxu1 }
0x1137   :  { %v1946_v56 = vld [vmem:[%s2914_s6 + $0x1] ss:$0 sm:$0xff] }
0x1138   :  { %v1518_v58 = vpop.f32.mrf.mxu1 }
0x113a   :  { %v2177_v60 = vpop.f32.mrf.mxu1 }
0x1197   :  { %v1297_v61 = vpop.permute.xlu1 %1296 }
0x1198   :  { %1299 = vst.msk [vmem:[#allocation2] sm:$0xff] %vm423_vm8, %v1297_v61 }
0x119f   :  { %v1526_v63 = vld [vmem:[#allocation2] sm:$0xff] }
0x11a7   :  { %v1523_v62 = vpop.permute.xlu1 %1522 }
0x11a8   :  { %1525 = vst.msk [vmem:[#allocation2 + $0x8] sm:$0xff] %vm423_vm8, %v1523_v62 }
0x11af   :  { %v1527_v27 = vld [vmem:[#allocation2 + $0x8] sm:$0xff] }
0x11b0   :  { %v1528_v33 = vpack.c.bf16 %v1527_v27, %v1526_v63 }
0x11b2   :  { %2183 = vmatmul.mubr.msk.bf16.vlgmr.msra.gmra.mxu0 %vm90_vm0, %v1528_v33 }
0x11b3   :  { %2210 = vmatprep.mubr.msk.bf16.mxu0 %vm2361_vm1, %v2360_v9  ;;  %2195 = vmatpush3.bf16.msra.mxu0 %v2247_v48 }
0x11b4   :  { %2196 = vmatprep.subr.bf16.mxu0 %v2360_v9 }
0x11b7   :  { %2197 = vmatpush3.bf16.msra.mxu0 %v2248_v20 }
0x11b8   :  { %2198 = vmatprep.subr.bf16.mxu0 %v2360_v9 }
0x11bb   :  { %2199 = vmatpush3.bf16.msra.mxu0 %v2249_v25 }
0x11bc   :  { %2200 = vmatprep.subr.bf16.mxu0 %v2360_v9 }
0x11bf   :  { %2201 = vmatpush3.bf16.msra.mxu0 %v2250_v49 }
0x11c0   :  { %2202 = vmatprep.subr.bf16.mxu0 %v2360_v9 }
0x11c3   :  { %2203 = vmatpush3.bf16.msra.mxu0 %v2251_v50 }
0x11c4   :  { %2204 = vmatprep.subr.bf16.mxu0 %v2360_v9 }
0x11c7   :  { %2205 = vmatpush3.bf16.msra.mxu0 %v2252_v53 }
0x11c8   :  { %2206 = vmatprep.subr.bf16.mxu0 %v2360_v9 }
0x11cb   :  { %2207 = vmatpush3.bf16.msra.mxu0 %v2253_v54 }
0x11cc   :  { %2208 = vmatprep.subr.bf16.mxu0 %v2360_v9 }
0x11cf   :  { %2209 = vmatpush3.bf16.msra.mxu0 %v2254_v55 }
0x1272   :  { %v1578_v3 = vpop.f32.mrf.mxu0 }
0x1273   :  { %v1585_v0 = vadd.f32 %v1578_v3, %v2682_v15 }
0x1274   :  { %v2184_v1 = vpop.f32.mrf.mxu0 }
0x1275   :  { %v2823_v5 = vadd.f32 %v1590_v59, %v1585_v0 }
0x1276   :  { %v1581_v47 = vpop.f32.mrf.mxu0 }
0x1277   :  { %v1586_v7 = vadd.f32 %v1581_v47, %v2689_v21  ;;  %v1593_v8 = vsel %vm90_vm0, %v2823_v5, 0.0  ;;  %v1601_v39 = vmul.f32 %v2823_v5, %v2823_v5 }
0x1278   :  { %1594 = vadd.xlane.f32.xlu0 %v1593_v8  ;;  %v2185_v11 = vpop.f32.mrf.mxu0 }
0x1279   :  { %v2830_v12 = vadd.f32 %v1590_v59, %v1586_v7  ;;  %v1603_v52 = vsel %vm90_vm0, %v1601_v39, 0.0 }
0x127b   :  { %v1596_v15 = vsel %vm90_vm0, %v2830_v12, 0.0  ;;  %v1602_v13 = vmul.f32 %v2830_v12, %v2830_v12 }
0x127c   :  { %1604 = vadd.xlane.f32.xlu0 %v1603_v52  ;;  %1597 = vadd.xlane.f32.xlu1 %v1596_v15 }
0x127d   :  { %v1606_v21 = vsel %vm90_vm0, %v1602_v13, 0.0  ;;  %v1807_v13 = vrot.slane %v2708_v45, %v931_v10 }
0x1280   :  { %1607 = vadd.xlane.f32.xlu0 %v1606_v21 }
0x1301   :  { %v1595_v17 = vpop.xlane.xlu0 %1594 }
0x1302   :  { %v1599_v4 = vmul.f32 0.03125, %v1595_v17 }
0x1304   :  { %v1611_v51 = vmul.f32 %v1599_v4, %v1599_v4  ;;  %v1615_v32 = vsub.f32 %v2823_v5, %v1599_v4 }
0x1305   :  { %v1605_v18 = vpop.xlane.xlu0 %1604  ;;  %v1598_v19 = vpop.xlane.xlu1 %1597 }
0x1306   :  { %v1609_v28 = vmul.f32 0.03125, %v1605_v18  ;;  %v1600_v57 = vmul.f32 0.03125, %v1598_v19 }
0x1308   :  { %v1613_v22 = vsub.f32 %v1609_v28, %v1611_v51  ;;  %v1612_v24 = vmul.f32 %v1600_v57, %v1600_v57  ;;  %v1616_v36 = vsub.f32 %v2830_v12, %v1600_v57 }
0x1309   :  { %v1608_v2 = vpop.xlane.xlu0 %1607 }
0x130a   :  { %v1617_v23 = vadd.f32 1e-05, %v1613_v22  ;;  %v1610_v29 = vmul.f32 0.03125, %v1608_v2 }
0x130c   :  { %2307 = vrsqrt.f32 %v1617_v23  ;;  %v1614_v30 = vsub.f32 %v1610_v29, %v1612_v24 }
0x130e   :  { %v1618_v31 = vadd.f32 1e-05, %v1614_v30 }
0x1310   :  { %2309 = vrsqrt.f32 %v1618_v31 }
0x1319   :  { %v2308_v6 = vpop.eup %2307 }
0x131a   :  { %v1621_v34 = vmul.f32 %v2308_v6, %v1615_v32 }
0x131c   :  { %v1627_v40 = vmul.f32 %v1626_v35, %v1621_v34 }
0x131d   :  { %v2310_v37 = vpop.eup %2309 }
0x131e   :  { %v1622_v38 = vmul.f32 %v2310_v37, %v1616_v36  ;;  %v1633_v43 = vadd.f32 %v1632_v41, %v1627_v40 }
0x1320   :  { %v1628_v42 = vmul.f32 %v1626_v35, %v1622_v38 }
0x1322   :  { %v1634_v44 = vadd.f32 %v1632_v41, %v1628_v42  ;;  %v1960_v41 = vld [vmem:[%s2917_s9] ss:$0 sm:$0xff] }
0x1324   :  { %v1635_v46 = vpack.c.bf16 %v1634_v44, %v1633_v43  ;;  %v1961_v43 = vld [vmem:[%s2917_s9 + $0x1] ss:$0 sm:$0xff] }
0x1326   :  { %2191 = vmatmul.mubr.msk.bf16.vlgmr.msra.gmra.mxu1 %vm90_vm0, %v1635_v46 }
0x13e6   :  { %v1689_v58 = vpop.f32.mrf.mxu1 }
0x13e7   :  { %v1690_v60 = vadd.f32 %v1946_v56, %v1689_v58 }
0x13e8   :  { %v2192_v61 = vpop.f32.mrf.mxu1 }
0x13e9   :  { %v1950_v62 = vmul.f32 -1.702, %v1690_v60 }
0x13ea   :  { %v1692_v63 = vpop.f32.mrf.mxu1 }
0x13eb   :  { %v1700_v27 = vmul.f32 1.442695, %v1950_v62  ;;  %v1693_v33 = vadd.f32 %v1946_v56, %v1692_v63 }
0x13ec   :  { %v2193_v59 = vpop.f32.mrf.mxu1 }
0x13ed   :  { %2311 = vpow2.f32 %v1700_v27  ;;  %v1951_v3 = vmul.f32 -1.702, %v1693_v33 }
0x13ef   :  { %v1702_v9 = vmul.f32 1.442695, %v1951_v3 }
0x13f1   :  { %2313 = vpow2.f32 %v1702_v9 }
0x13fa   :  { %v2312_v0 = vpop.eup %2311 }
0x13fb   :  { %v1704_v1 = vadd.f32 1.0, %v2312_v0 }
0x13fd   :  { %2315 = vrcp.f32 %v1704_v1 }
0x13fe   :  { %v2314_v47 = vpop.eup %2313 }
0x13ff   :  { %v1705_v7 = vadd.f32 1.0, %v2314_v47 }
0x1401   :  { %2317 = vrcp.f32 %v1705_v7 }
0x140a   :  { %v2316_v8 = vpop.eup %2315 }
0x140b   :  { %v1710_v11 = vmul.f32 %v2316_v8, %v1690_v60 }
0x140e   :  { %v2318_v39 = vpop.eup %2317 }
0x140f   :  { %v1711_v52 = vmul.f32 %v2318_v39, %v1693_v33 }
0x1411   :  { %v1712_v15 = vpack.c.bf16 %v1711_v52, %v1710_v11 }
0x1413   :  { %2211 = vmatmul.mubr.bf16.vlgmr.msra.gmra.mxu0 %v1712_v15 }
0x14d3   :  { %v1795_v21 = vpop.f32.mrf.mxu0 }
0x14d4   :  { %v1802_v14 = vadd.f32 %v1795_v21, %v2823_v5 }
0x14d5   :  { %v2212_v16 = vpop.f32.mrf.mxu0 }
0x14d6   :  { %v1808_v17 = vadd.f32 %v1807_v13, %v1802_v14 }
0x14d7   :  { %v1798_v4 = vpop.f32.mrf.mxu0 }
0x14d8   :  { %v1803_v18 = vadd.f32 %v1798_v4, %v2830_v12  ;;  %v1812_v19 = vsel %vm90_vm0, %v1808_v17, 0.0  ;;  %v1820_v51 = vmul.f32 %v1808_v17, %v1808_v17 }
0x14d9   :  { %1813 = vadd.xlane.f32.xlu0 %v1812_v19  ;;  %v2213_v28 = vpop.f32.mrf.mxu0 }
0x14da   :  { %v1809_v57 = vadd.f32 %v1807_v13, %v1803_v18  ;;  %v1822_v22 = vsel %vm90_vm0, %v1820_v51, 0.0 }
0x14dc   :  { %v1815_v26 = vsel %vm90_vm0, %v1809_v57, 0.0  ;;  %v1821_v2 = vmul.f32 %v1809_v57, %v1809_v57 }
0x14dd   :  { %1823 = vadd.xlane.f32.xlu0 %v1822_v22  ;;  %1816 = vadd.xlane.f32.xlu1 %v1815_v26 }
0x14de   :  { %v1825_v10 = vsel %vm90_vm0, %v1821_v2, 0.0 }
0x14e1   :  { %1826 = vadd.xlane.f32.xlu1 %v1825_v10 }
0x1562   :  { %v1814_v45 = vpop.xlane.xlu0 %1813 }
0x1563   :  { %v1818_v5 = vmul.f32 0.03125, %v1814_v45 }
0x1565   :  { %v1830_v24 = vmul.f32 %v1818_v5, %v1818_v5  ;;  %v1834_v38 = vsub.f32 %v1808_v17, %v1818_v5 }
0x1566   :  { %v1824_v23 = vpop.xlane.xlu0 %1823  ;;  %v1817_v12 = vpop.xlane.xlu1 %1816 }
0x1567   :  { %v1828_v29 = vmul.f32 0.03125, %v1824_v23  ;;  %v1819_v30 = vmul.f32 0.03125, %v1817_v12 }
0x1569   :  { %v1832_v31 = vsub.f32 %v1828_v29, %v1830_v24  ;;  %v1831_v34 = vmul.f32 %v1819_v30, %v1819_v30  ;;  %v1835_v44 = vsub.f32 %v1809_v57, %v1819_v30 }
0x156a   :  { %v1827_v32 = vpop.xlane.xlu1 %1826 }
0x156b   :  { %v1836_v6 = vadd.f32 1e-05, %v1832_v31  ;;  %v1829_v35 = vmul.f32 0.03125, %v1827_v32 }
0x156d   :  { %2319 = vrsqrt.f32 %v1836_v6  ;;  %v1833_v36 = vsub.f32 %v1829_v35, %v1831_v34 }
0x156f   :  { %v1837_v37 = vadd.f32 1e-05, %v1833_v36 }
0x1571   :  { %2321 = vrsqrt.f32 %v1837_v37 }
0x157a   :  { %v2320_v40 = vpop.eup %2319 }
0x157b   :  { %v1840_v42 = vmul.f32 %v2320_v40, %v1834_v38 }
0x157d   :  { %v1846_v46 = vmul.f32 %v1960_v41, %v1840_v42 }
0x157e   :  { %v2322_v48 = vpop.eup %2321 }
0x157f   :  { %v1841_v20 = vmul.f32 %v2322_v48, %v1835_v44  ;;  %v1852_v25 = vadd.f32 %v1961_v43, %v1846_v46 }
0x1581   :  { %v1847_v49 = vmul.f32 %v1960_v41, %v1841_v20  ;;  %1854 = vst.msk [vmem:[#allocation5] sm:$0xff] %vm90_vm0, %v1852_v25 }
0x1583   :  { %v1853_v50 = vadd.f32 %v1961_v43, %v1847_v49 }
0x1585   :  { %1855 = vst.msk [vmem:[#allocation5 + $0x8] sm:$0xff] %vm90_vm0, %v1853_v50 }
0x1586   :  { %2346 = shalt.err (!%p2343_p9)
}
0x1587   :  { %s2370_s9 = smov 128   ;;  %s2371_s4 = smov 8  }
0x1588   :  { %1867 = dma.vmem_to_hbm [thread:$0]  %s1862_s29, 256, %s2918_s10, [#allocation6], %s2370_s9, %s2370_s9, %s2371_s4  }
0x1589   :  { %2357 = dma.done.wait [#allocation6], 256  }
0x158a   :  { %2358 = vsyncadd [#allocation6], 4294967040 }
0x158b   :  { %1871 = vsyncpa [#allocation6], 1 }

</bundles_post_ra>
